<compile_context>
chip_gen: v5e
topology: v5e:2x2
jax: 0.10.0
libtpu: 0.0.40
codegen_flags: <defaults>
</compile_context>

<pallas_src>
import jax
import jax.numpy as jnp
from jax.experimental import pallas as pl
from jax.experimental.pallas import tpu as pltpu


def _tpu_vmem_bytes():
    try:
        return int(pltpu.get_tpu_info().vmem_capacity_bytes)
    except Exception:
        return 64 * 1024 * 1024  # conservative default (v7x-sized VMEM)


def _pick_channel_block(cin, max_cb=8):
    for cb in range(min(cin, max_cb), 0, -1):
        if cin % cb == 0:
            return cb
    return 1


def _pick_tile_h(h8, w, cb, cout, itemsize, vmem_bytes):
    """Largest 8-aligned strip height dividing h8 under a generation-aware
    VMEM budget (bigger strips on 128 MiB parts, smaller on v7x's 64 MiB)."""
    budget = max(8 << 20, min(24 << 20, vmem_bytes // 5))
    n_buf = 3 if vmem_bytes >= (96 << 20) else 2
    best, th = 8, 8
    while th <= h8:
        if h8 % th == 0:
            need = itemsize * (n_buf * cb * th * w        # main strip buffers
                               + 2 * 2 * cb * 8 * w       # two 8-row halos (2x buffered)
                               + 2 * cout * th * w)       # output block (2x buffered)
            need += 4 * cout * th * w                     # f32 accumulator scratch
            need += 4 * (cb + 8) * th * w                 # in-flight f32 temporaries
            if need <= budget:
                best = th
        th += 8
    return best, n_buf


def separable_conv2d(x, w_dw, w_pw, *, tile_h=None):
    """x: (B, Cin, H, W); w_dw: (Cin, 1, 3, 3); w_pw: (Cout, Cin, 1, 1)."""
    B, Cin, H, W = map(int, x.shape)
    Cout = int(w_pw.shape[0])
    assert tuple(w_dw.shape) == (Cin, 1, 3, 3), "only kernel_size=3, stride=1, padding=1"
    assert tuple(w_pw.shape) == (Cout, Cin, 1, 1)
    assert W >= 2

    itemsize = jnp.dtype(x.dtype).itemsize
    H8 = ((H + 7) // 8) * 8
    if H8 != H:
        # Only when H is not 8-row aligned (costs one extra HBM pass then).
        x = jnp.pad(x, ((0, 0), (0, 0), (0, H8 - H), (0, 0)))

    CB = _pick_channel_block(Cin)
    n_cb = Cin // CB
    use_acc = n_cb > 1

    vmem_cap = _tpu_vmem_bytes()
    if tile_h is None:
        TH, n_buf = _pick_tile_h(H8, W, CB, Cout, itemsize, vmem_cap)
        # Only split the single strip when the grid would otherwise have one
        # step (>=2 pipeline steps / feeds a second TensorCore on v7x).
        if B == 1 and n_cb == 1 and H8 // TH == 1 and TH % 16 == 0:
            TH //= 2
    else:
        TH, n_buf = int(tile_h), 2
    assert TH % 8 == 0 and H8 % TH == 0
    nH = H8 // TH
    tb = TH // 8
    rb_total = H8 // 8

    # Flat scalar weight tables for SMEM.
    dw_flat = w_dw.astype(jnp.float32).reshape(Cin * 9)      # [c*9 + kh*3 + kw]
    pw_flat = w_pw.astype(jnp.float32).reshape(Cout * Cin)   # [co*Cin + ci]

    def kernel(dw_ref, pw_ref, xu_ref, xm_ref, xd_ref, o_ref, *scr):
        acc_ref = scr[0] if use_acc else None
        h = pl.program_id(1)
        cb_idx = pl.program_id(2)
        f32 = jnp.float32

        # Image borders: the halo index_maps are clamped at the edges, so zero
        # their contribution there instead (padding=1 semantics).
        top_scale = jnp.where(h == 0, 0.0, 1.0).astype(f32)
        bot_scale = jnp.where(h == nH - 1, 0.0, 1.0).astype(f32)

        def shift_left(a):          # y[:, w] = a[:, w+1], zero in the last col
            z = jnp.zeros((a.shape[0], 1), f32)
            return jnp.concatenate([a[:, 1:], z], axis=1)

        def shift_right(a):         # y[:, w] = a[:, w-1], zero in the first col
            z = jnp.zeros((a.shape[0], 1), f32)
            return jnp.concatenate([z, a[:, :-1]], axis=1)

        def hconv(xc, xl, xr, wbase, kh):   # one stencil row, horizontally convolved
            return (xr * dw_ref[wbase + kh * 3 + 0]
                    + xc * dw_ref[wbase + kh * 3 + 1]
                    + xl * dw_ref[wbase + kh * 3 + 2])

        # ---- depthwise 3x3 for this channel block -------------------------
        dw_vals = []
        for ci in range(CB):
            wbase = (cb_idx * CB + ci) * 9
            xm = xm_ref[0, ci].astype(f32)                     # (TH, W)
            xl = shift_left(xm)
            xr = shift_right(xm)
            g0 = hconv(xm, xl, xr, wbase, 0)
            g1 = hconv(xm, xl, xr, wbase, 1)
            g2 = hconv(xm, xl, xr, wbase, 2)

            # Halo rows (row -1 / row TH) contribute only to the first / last
            # output row of the strip -- no (TH+2)-row buffer is materialized.
            xu = xu_ref[0, ci, pl.ds(7, 1), :].astype(f32) * top_scale   # (1, W)
            xd = xd_ref[0, ci, pl.ds(0, 1), :].astype(f32) * bot_scale   # (1, W)
            t0 = hconv(xu, shift_left(xu), shift_right(xu), wbase, 0)
            b2 = hconv(xd, shift_left(xd), shift_right(xd), wbase, 2)

            g0s = jnp.concatenate([t0, g0[:-1, :]], axis=0)    # g0 shifted down one row
            g2s = jnp.concatenate([g2[1:, :], b2], axis=0)     # g2 shifted up one row
            dw_vals.append(g0s + g1 + g2s)

        # ---- pointwise 1x1 (VPU broadcast, accumulated over channel blocks) -
        for co in range(Cout):
            pbase = co * Cin + cb_idx * CB
            part = dw_vals[0] * pw_ref[pbase + 0]
            for ci in range(1, CB):
                part = part + dw_vals[ci] * pw_ref[pbase + ci]

            if not use_acc:
                o_ref[0, co] = part.astype(o_ref.dtype)
            else:
                @pl.when(cb_idx == 0)
                def _(part=part, co=co):
                    acc_ref[co] = part

                @pl.when(jnp.logical_and(cb_idx > 0, cb_idx < n_cb - 1))
                def _(part=part, co=co):
                    acc_ref[co] = acc_ref[co] + part

                @pl.when(cb_idx == n_cb - 1)
                def _(part=part, co=co):
                    o_ref[0, co] = (acc_ref[co] + part).astype(o_ref.dtype)

    # Weights live whole in SMEM; x is read through three views: the TH-row
    # main strip plus clamped 8-row top / bottom halo blocks.
    main_block = (1, CB, TH, W)
    main_map = lambda b, h, c: (b, c, h, 0)
    if n_buf >= 3:
        try:
            main_spec = pl.BlockSpec(main_block, main_map,
                                     pipeline_mode=pl.Buffered(3))
        except (TypeError, AttributeError):
            main_spec = pl.BlockSpec(main_block, main_map)
    else:
        main_spec = pl.BlockSpec(main_block, main_map)

    in_specs = [
        pl.BlockSpec(memory_space=pltpu.MemorySpace.SMEM),    # depthwise weights
        pl.BlockSpec(memory_space=pltpu.MemorySpace.SMEM),    # pointwise weights
        pl.BlockSpec((1, CB, 8, W),                           # top halo (8 rows)
                     lambda b, h, c: (b, c, jnp.maximum(h * tb - 1, 0), 0)),
        main_spec,                                            # main TH-row strip
        pl.BlockSpec((1, CB, 8, W),                           # bottom halo (8 rows)
                     lambda b, h, c: (b, c, jnp.minimum((h + 1) * tb, rb_total - 1), 0)),
    ]
    out_specs = pl.BlockSpec((1, Cout, TH, W), lambda b, h, c: (b, 0, h, 0))
    scratch_shapes = [pltpu.VMEM((Cout, TH, W), jnp.float32)] if use_acc else []

    flops = 2 * B * H8 * W * Cin * (9 + Cout)
    bytes_accessed = ((B * Cin * H8 * W                       # main input read
                       + 2 * B * nH * Cin * 8 * W             # halo re-reads
                       + B * Cout * H8 * W) * itemsize        # output write
                      + (dw_flat.size + pw_flat.size) * 4)

    vmem_limit = int(max(16 << 20, min(vmem_cap // 2, 64 << 20)))

    out = pl.pallas_call(
        kernel,
        out_shape=jax.ShapeDtypeStruct((B, Cout, H8, W), x.dtype),
        grid_spec=pltpu.PrefetchScalarGridSpec(
            num_scalar_prefetch=0,
            grid=(B, nH, n_cb),
            in_specs=in_specs,
            out_specs=out_specs,
            scratch_shapes=scratch_shapes,
        ),
        compiler_params=pltpu.CompilerParams(
            dimension_semantics=("parallel", "parallel", "arbitrary"),
            vmem_limit_bytes=vmem_limit,
        ),
        cost_estimate=pl.CostEstimate(
            flops=flops, transcendentals=0, bytes_accessed=bytes_accessed),
    )(dw_flat, pw_flat, x, x, x)

    if H8 != H:
        out = out[:, :, :H, :]
    return out


def _reference(x, w_dw, w_pw):
    cin = x.shape[1]
    y = jax.lax.conv_general_dilated(
        x, w_dw, window_strides=(1, 1), padding=((1, 1), (1, 1)),
        dimension_numbers=("NCHW", "OIHW", "NCHW"), feature_group_count=cin)
    return jax.lax.conv_general_dilated(
        y, w_pw, window_strides=(1, 1), padding="VALID",
        dimension_numbers=("NCHW", "OIHW", "NCHW"))


if __name__ == "__main__":
    key = jax.random.PRNGKey(0)
    k1, k2, k3, k4, k5, k6 = jax.random.split(key, 6)

    # Case 1: the module's default small config (single channel block, 1 strip).
    x1 = jax.random.normal(k1, (2, 4, 16, 16), dtype=jnp.float32)
    dw1 = jax.random.normal(k2, (4, 1, 3, 3), dtype=jnp.float32) * 0.1
    pw1 = jax.random.normal(k3, (8, 4, 1, 1), dtype=jnp.float32) * 0.1
    out1 = jax.block_until_ready(separable_conv2d(x1, dw1, pw1))
    ref1 = jax.block_until_ready(_reference(x1, dw1, pw1))
    assert out1.shape == (2, 8, 16, 16)
    assert jnp.allclose(out1, ref1, atol=1e-4, rtol=1e-4)

    # Case 2: exercises H-strip halos (nH=3) and channel-block accumulation
    # (Cin=16 -> two channel blocks of 8, VMEM accumulator scratch path).
    x2 = jax.random.normal(k4, (1, 16, 24, 16), dtype=jnp.float32)
    dw2 = jax.random.normal(k5, (16, 1, 3, 3), dtype=jnp.float32) * 0.1
    pw2 = jax.random.normal(k6, (8, 16, 1, 1), dtype=jnp.float32) * 0.1
    out2 = jax.block_until_ready(separable_conv2d(x2, dw2, pw2, tile_h=8))
    ref2 = jax.block_until_ready(_reference(x2, dw2, pw2))
    assert out2.shape == (1, 8, 24, 16)
    assert jnp.allclose(out2, ref2, atol=1e-4, rtol=1e-4)

    print("KERNEL_OK")
</pallas_src>

<mosaic_0001>
module attributes {stable_mosaic.version = 11 : i64} {
  func.func @kernel(%arg0: i32, %arg1: i32, %arg2: i32, %arg3: memref<36xf32, #tpu.memory_space<smem>>, %arg4: memref<32xf32, #tpu.memory_space<smem>>, %arg5: memref<1x4x8x16xf32, #tpu.memory_space<vmem>>, %arg6: memref<1x4x16x16xf32, #tpu.memory_space<vmem>>, %arg7: memref<1x4x8x16xf32, #tpu.memory_space<vmem>>, %arg8: memref<1x8x16x16xf32, #tpu.memory_space<vmem>>) attributes {dimension_semantics = [#tpu.dimension_semantics<parallel>, #tpu.dimension_semantics<parallel>, #tpu.dimension_semantics<arbitrary>], iteration_bounds = array<i64: 2, 1, 1>, scalar_prefetch = 0 : i64, scratch_operands = 0 : i64, tpu.core_type = #tpu.core_type<tc>, window_params = [{transform_indices = @transform_0, window_bounds = array<i64: 36>}, {transform_indices = @transform_1, window_bounds = array<i64: 32>}, {transform_indices = @transform_2, window_bounds = array<i64: 1, 4, 8, 16>}, {transform_indices = @transform_3, window_bounds = array<i64: 1, 4, 16, 16>}, {transform_indices = @transform_4, window_bounds = array<i64: 1, 4, 8, 16>}, {transform_indices = @transform_5, window_bounds = array<i64: 1, 8, 16, 16>}]} {
    %c0_i32 = arith.constant 0 : i32
    %0 = arith.cmpi eq, %arg1, %c0_i32 : i32
    %cst = arith.constant 0.000000e+00 : f32
    %cst_0 = arith.constant 1.000000e+00 : f32
    %1 = arith.select %0, %cst, %cst_0 : f32
    %c0_i32_1 = arith.constant 0 : i32
    %2 = arith.cmpi eq, %arg1, %c0_i32_1 : i32
    %cst_2 = arith.constant 0.000000e+00 : f32
    %cst_3 = arith.constant 1.000000e+00 : f32
    %3 = arith.select %2, %cst_2, %cst_3 : f32
    %c4_i32 = arith.constant 4 : i32
    %4 = arith.muli %arg2, %c4_i32 : i32
    %c0_i32_4 = arith.constant 0 : i32
    %5 = arith.addi %4, %c0_i32_4 : i32
    %c9_i32 = arith.constant 9 : i32
    %6 = arith.muli %5, %c9_i32 : i32
    %c0 = arith.constant 0 : index
    %c0_5 = arith.constant 0 : index
    %c0_6 = arith.constant 0 : index
    %c0_7 = arith.constant 0 : index
    %7 = vector.load %arg6[%c0, %c0_5, %c0_6, %c0_7] : memref<1x4x16x16xf32, #tpu.memory_space<vmem>>, vector<1x1x16x16xf32>
    %8 = vector.shape_cast %7 : vector<1x1x16x16xf32> to vector<16x16xf32>
    %cst_8 = arith.constant 0.000000e+00 : f32
    %9 = vector.broadcast %cst_8 : f32 to vector<16x1xf32>
    %10 = vector.extract_strided_slice %8 {offsets = [0, 1], sizes = [16, 15], strides = [1, 1]} : vector<16x16xf32> to vector<16x15xf32>
    %11 = tpu.concatenate %10, %9 in 1 : vector<16x15xf32>, vector<16x1xf32> -> vector<16x16xf32>
    %cst_9 = arith.constant 0.000000e+00 : f32
    %12 = vector.broadcast %cst_9 : f32 to vector<16x1xf32>
    %13 = vector.extract_strided_slice %8 {offsets = [0, 0], sizes = [16, 15], strides = [1, 1]} : vector<16x16xf32> to vector<16x15xf32>
    %14 = tpu.concatenate %12, %13 in 1 : vector<16x1xf32>, vector<16x15xf32> -> vector<16x16xf32>
    %c0_i32_10 = arith.constant 0 : i32
    %15 = arith.addi %6, %c0_i32_10 : i32
    %c0_i32_11 = arith.constant 0 : i32
    %16 = arith.addi %15, %c0_i32_11 : i32
    %17 = arith.index_cast %16 : i32 to index
    %18 = memref.load %arg3[%17] : memref<36xf32, #tpu.memory_space<smem>>
    %19 = vector.broadcast %18 : f32 to vector<16x16xf32>
    %20 = arith.mulf %14, %19 : vector<16x16xf32>
    %c0_i32_12 = arith.constant 0 : i32
    %21 = arith.addi %6, %c0_i32_12 : i32
    %c1_i32 = arith.constant 1 : i32
    %22 = arith.addi %21, %c1_i32 : i32
    %23 = arith.index_cast %22 : i32 to index
    %24 = memref.load %arg3[%23] : memref<36xf32, #tpu.memory_space<smem>>
    %25 = vector.broadcast %24 : f32 to vector<16x16xf32>
    %26 = arith.mulf %8, %25 : vector<16x16xf32>
    %27 = arith.addf %20, %26 : vector<16x16xf32>
    %c0_i32_13 = arith.constant 0 : i32
    %28 = arith.addi %6, %c0_i32_13 : i32
    %c2_i32 = arith.constant 2 : i32
    %29 = arith.addi %28, %c2_i32 : i32
    %30 = arith.index_cast %29 : i32 to index
    %31 = memref.load %arg3[%30] : memref<36xf32, #tpu.memory_space<smem>>
    %32 = vector.broadcast %31 : f32 to vector<16x16xf32>
    %33 = arith.mulf %11, %32 : vector<16x16xf32>
    %34 = arith.addf %27, %33 : vector<16x16xf32>
    %c3_i32 = arith.constant 3 : i32
    %35 = arith.addi %6, %c3_i32 : i32
    %c0_i32_14 = arith.constant 0 : i32
    %36 = arith.addi %35, %c0_i32_14 : i32
    %37 = arith.index_cast %36 : i32 to index
    %38 = memref.load %arg3[%37] : memref<36xf32, #tpu.memory_space<smem>>
    %39 = vector.broadcast %38 : f32 to vector<16x16xf32>
    %40 = arith.mulf %14, %39 : vector<16x16xf32>
    %c3_i32_15 = arith.constant 3 : i32
    %41 = arith.addi %6, %c3_i32_15 : i32
    %c1_i32_16 = arith.constant 1 : i32
    %42 = arith.addi %41, %c1_i32_16 : i32
    %43 = arith.index_cast %42 : i32 to index
    %44 = memref.load %arg3[%43] : memref<36xf32, #tpu.memory_space<smem>>
    %45 = vector.broadcast %44 : f32 to vector<16x16xf32>
    %46 = arith.mulf %8, %45 : vector<16x16xf32>
    %47 = arith.addf %40, %46 : vector<16x16xf32>
    %c3_i32_17 = arith.constant 3 : i32
    %48 = arith.addi %6, %c3_i32_17 : i32
    %c2_i32_18 = arith.constant 2 : i32
    %49 = arith.addi %48, %c2_i32_18 : i32
    %50 = arith.index_cast %49 : i32 to index
    %51 = memref.load %arg3[%50] : memref<36xf32, #tpu.memory_space<smem>>
    %52 = vector.broadcast %51 : f32 to vector<16x16xf32>
    %53 = arith.mulf %11, %52 : vector<16x16xf32>
    %54 = arith.addf %47, %53 : vector<16x16xf32>
    %c6_i32 = arith.constant 6 : i32
    %55 = arith.addi %6, %c6_i32 : i32
    %c0_i32_19 = arith.constant 0 : i32
    %56 = arith.addi %55, %c0_i32_19 : i32
    %57 = arith.index_cast %56 : i32 to index
    %58 = memref.load %arg3[%57] : memref<36xf32, #tpu.memory_space<smem>>
    %59 = vector.broadcast %58 : f32 to vector<16x16xf32>
    %60 = arith.mulf %14, %59 : vector<16x16xf32>
    %c6_i32_20 = arith.constant 6 : i32
    %61 = arith.addi %6, %c6_i32_20 : i32
    %c1_i32_21 = arith.constant 1 : i32
    %62 = arith.addi %61, %c1_i32_21 : i32
    %63 = arith.index_cast %62 : i32 to index
    %64 = memref.load %arg3[%63] : memref<36xf32, #tpu.memory_space<smem>>
    %65 = vector.broadcast %64 : f32 to vector<16x16xf32>
    %66 = arith.mulf %8, %65 : vector<16x16xf32>
    %67 = arith.addf %60, %66 : vector<16x16xf32>
    %c6_i32_22 = arith.constant 6 : i32
    %68 = arith.addi %6, %c6_i32_22 : i32
    %c2_i32_23 = arith.constant 2 : i32
    %69 = arith.addi %68, %c2_i32_23 : i32
    %70 = arith.index_cast %69 : i32 to index
    %71 = memref.load %arg3[%70] : memref<36xf32, #tpu.memory_space<smem>>
    %72 = vector.broadcast %71 : f32 to vector<16x16xf32>
    %73 = arith.mulf %11, %72 : vector<16x16xf32>
    %74 = arith.addf %67, %73 : vector<16x16xf32>
    %c0_24 = arith.constant 0 : index
    %c0_25 = arith.constant 0 : index
    %c7 = arith.constant 7 : index
    %c0_26 = arith.constant 0 : index
    %75 = vector.load %arg5[%c0_24, %c0_25, %c7, %c0_26] : memref<1x4x8x16xf32, #tpu.memory_space<vmem>>, vector<1x1x1x16xf32>
    %76 = vector.shape_cast %75 : vector<1x1x1x16xf32> to vector<1x16xf32>
    %77 = vector.broadcast %1 : f32 to vector<1x16xf32>
    %78 = arith.mulf %76, %77 : vector<1x16xf32>
    %c0_27 = arith.constant 0 : index
    %c0_28 = arith.constant 0 : index
    %c0_29 = arith.constant 0 : index
    %c0_30 = arith.constant 0 : index
    %79 = vector.load %arg7[%c0_27, %c0_28, %c0_29, %c0_30] : memref<1x4x8x16xf32, #tpu.memory_space<vmem>>, vector<1x1x1x16xf32>
    %80 = vector.shape_cast %79 : vector<1x1x1x16xf32> to vector<1x16xf32>
    %81 = vector.broadcast %3 : f32 to vector<1x16xf32>
    %82 = arith.mulf %80, %81 : vector<1x16xf32>
    %cst_31 = arith.constant 0.000000e+00 : f32
    %83 = vector.broadcast %cst_31 : f32 to vector<1x1xf32>
    %84 = vector.extract_strided_slice %78 {offsets = [0, 1], sizes = [1, 15], strides = [1, 1]} : vector<1x16xf32> to vector<1x15xf32>
    %85 = tpu.concatenate %84, %83 in 1 : vector<1x15xf32>, vector<1x1xf32> -> vector<1x16xf32>
    %cst_32 = arith.constant 0.000000e+00 : f32
    %86 = vector.broadcast %cst_32 : f32 to vector<1x1xf32>
    %87 = vector.extract_strided_slice %78 {offsets = [0, 0], sizes = [1, 15], strides = [1, 1]} : vector<1x16xf32> to vector<1x15xf32>
    %88 = tpu.concatenate %86, %87 in 1 : vector<1x1xf32>, vector<1x15xf32> -> vector<1x16xf32>
    %c0_i32_33 = arith.constant 0 : i32
    %89 = arith.addi %6, %c0_i32_33 : i32
    %c0_i32_34 = arith.constant 0 : i32
    %90 = arith.addi %89, %c0_i32_34 : i32
    %91 = arith.index_cast %90 : i32 to index
    %92 = memref.load %arg3[%91] : memref<36xf32, #tpu.memory_space<smem>>
    %93 = vector.broadcast %92 : f32 to vector<1x16xf32>
    %94 = arith.mulf %88, %93 : vector<1x16xf32>
    %c0_i32_35 = arith.constant 0 : i32
    %95 = arith.addi %6, %c0_i32_35 : i32
    %c1_i32_36 = arith.constant 1 : i32
    %96 = arith.addi %95, %c1_i32_36 : i32
    %97 = arith.index_cast %96 : i32 to index
    %98 = memref.load %arg3[%97] : memref<36xf32, #tpu.memory_space<smem>>
    %99 = vector.broadcast %98 : f32 to vector<1x16xf32>
    %100 = arith.mulf %78, %99 : vector<1x16xf32>
    %101 = arith.addf %94, %100 : vector<1x16xf32>
    %c0_i32_37 = arith.constant 0 : i32
    %102 = arith.addi %6, %c0_i32_37 : i32
    %c2_i32_38 = arith.constant 2 : i32
    %103 = arith.addi %102, %c2_i32_38 : i32
    %104 = arith.index_cast %103 : i32 to index
    %105 = memref.load %arg3[%104] : memref<36xf32, #tpu.memory_space<smem>>
    %106 = vector.broadcast %105 : f32 to vector<1x16xf32>
    %107 = arith.mulf %85, %106 : vector<1x16xf32>
    %108 = arith.addf %101, %107 : vector<1x16xf32>
    %cst_39 = arith.constant 0.000000e+00 : f32
    %109 = vector.broadcast %cst_39 : f32 to vector<1x1xf32>
    %110 = vector.extract_strided_slice %82 {offsets = [0, 1], sizes = [1, 15], strides = [1, 1]} : vector<1x16xf32> to vector<1x15xf32>
    %111 = tpu.concatenate %110, %109 in 1 : vector<1x15xf32>, vector<1x1xf32> -> vector<1x16xf32>
    %cst_40 = arith.constant 0.000000e+00 : f32
    %112 = vector.broadcast %cst_40 : f32 to vector<1x1xf32>
    %113 = vector.extract_strided_slice %82 {offsets = [0, 0], sizes = [1, 15], strides = [1, 1]} : vector<1x16xf32> to vector<1x15xf32>
    %114 = tpu.concatenate %112, %113 in 1 : vector<1x1xf32>, vector<1x15xf32> -> vector<1x16xf32>
    %c6_i32_41 = arith.constant 6 : i32
    %115 = arith.addi %6, %c6_i32_41 : i32
    %c0_i32_42 = arith.constant 0 : i32
    %116 = arith.addi %115, %c0_i32_42 : i32
    %117 = arith.index_cast %116 : i32 to index
    %118 = memref.load %arg3[%117] : memref<36xf32, #tpu.memory_space<smem>>
    %119 = vector.broadcast %118 : f32 to vector<1x16xf32>
    %120 = arith.mulf %114, %119 : vector<1x16xf32>
    %c6_i32_43 = arith.constant 6 : i32
    %121 = arith.addi %6, %c6_i32_43 : i32
    %c1_i32_44 = arith.constant 1 : i32
    %122 = arith.addi %121, %c1_i32_44 : i32
    %123 = arith.index_cast %122 : i32 to index
    %124 = memref.load %arg3[%123] : memref<36xf32, #tpu.memory_space<smem>>
    %125 = vector.broadcast %124 : f32 to vector<1x16xf32>
    %126 = arith.mulf %82, %125 : vector<1x16xf32>
    %127 = arith.addf %120, %126 : vector<1x16xf32>
    %c6_i32_45 = arith.constant 6 : i32
    %128 = arith.addi %6, %c6_i32_45 : i32
    %c2_i32_46 = arith.constant 2 : i32
    %129 = arith.addi %128, %c2_i32_46 : i32
    %130 = arith.index_cast %129 : i32 to index
    %131 = memref.load %arg3[%130] : memref<36xf32, #tpu.memory_space<smem>>
    %132 = vector.broadcast %131 : f32 to vector<1x16xf32>
    %133 = arith.mulf %111, %132 : vector<1x16xf32>
    %134 = arith.addf %127, %133 : vector<1x16xf32>
    %135 = vector.extract_strided_slice %34 {offsets = [0, 0], sizes = [15, 16], strides = [1, 1]} : vector<16x16xf32> to vector<15x16xf32>
    %136 = tpu.concatenate %108, %135 in 0 : vector<1x16xf32>, vector<15x16xf32> -> vector<16x16xf32>
    %137 = vector.extract_strided_slice %74 {offsets = [1, 0], sizes = [15, 16], strides = [1, 1]} : vector<16x16xf32> to vector<15x16xf32>
    %138 = tpu.concatenate %137, %134 in 0 : vector<15x16xf32>, vector<1x16xf32> -> vector<16x16xf32>
    %139 = arith.addf %136, %54 : vector<16x16xf32>
    %140 = arith.addf %139, %138 : vector<16x16xf32>
    %c4_i32_47 = arith.constant 4 : i32
    %141 = arith.muli %arg2, %c4_i32_47 : i32
    %c1_i32_48 = arith.constant 1 : i32
    %142 = arith.addi %141, %c1_i32_48 : i32
    %c9_i32_49 = arith.constant 9 : i32
    %143 = arith.muli %142, %c9_i32_49 : i32
    %c0_50 = arith.constant 0 : index
    %c1 = arith.constant 1 : index
    %c0_51 = arith.constant 0 : index
    %c0_52 = arith.constant 0 : index
    %144 = vector.load %arg6[%c0_50, %c1, %c0_51, %c0_52] : memref<1x4x16x16xf32, #tpu.memory_space<vmem>>, vector<1x1x16x16xf32>
    %145 = vector.shape_cast %144 : vector<1x1x16x16xf32> to vector<16x16xf32>
    %cst_53 = arith.constant 0.000000e+00 : f32
    %146 = vector.broadcast %cst_53 : f32 to vector<16x1xf32>
    %147 = vector.extract_strided_slice %145 {offsets = [0, 1], sizes = [16, 15], strides = [1, 1]} : vector<16x16xf32> to vector<16x15xf32>
    %148 = tpu.concatenate %147, %146 in 1 : vector<16x15xf32>, vector<16x1xf32> -> vector<16x16xf32>
    %cst_54 = arith.constant 0.000000e+00 : f32
    %149 = vector.broadcast %cst_54 : f32 to vector<16x1xf32>
    %150 = vector.extract_strided_slice %145 {offsets = [0, 0], sizes = [16, 15], strides = [1, 1]} : vector<16x16xf32> to vector<16x15xf32>
    %151 = tpu.concatenate %149, %150 in 1 : vector<16x1xf32>, vector<16x15xf32> -> vector<16x16xf32>
    %c0_i32_55 = arith.constant 0 : i32
    %152 = arith.addi %143, %c0_i32_55 : i32
    %c0_i32_56 = arith.constant 0 : i32
    %153 = arith.addi %152, %c0_i32_56 : i32
    %154 = arith.index_cast %153 : i32 to index
    %155 = memref.load %arg3[%154] : memref<36xf32, #tpu.memory_space<smem>>
    %156 = vector.broadcast %155 : f32 to vector<16x16xf32>
    %157 = arith.mulf %151, %156 : vector<16x16xf32>
    %c0_i32_57 = arith.constant 0 : i32
    %158 = arith.addi %143, %c0_i32_57 : i32
    %c1_i32_58 = arith.constant 1 : i32
    %159 = arith.addi %158, %c1_i32_58 : i32
    %160 = arith.index_cast %159 : i32 to index
    %161 = memref.load %arg3[%160] : memref<36xf32, #tpu.memory_space<smem>>
    %162 = vector.broadcast %161 : f32 to vector<16x16xf32>
    %163 = arith.mulf %145, %162 : vector<16x16xf32>
    %164 = arith.addf %157, %163 : vector<16x16xf32>
    %c0_i32_59 = arith.constant 0 : i32
    %165 = arith.addi %143, %c0_i32_59 : i32
    %c2_i32_60 = arith.constant 2 : i32
    %166 = arith.addi %165, %c2_i32_60 : i32
    %167 = arith.index_cast %166 : i32 to index
    %168 = memref.load %arg3[%167] : memref<36xf32, #tpu.memory_space<smem>>
    %169 = vector.broadcast %168 : f32 to vector<16x16xf32>
    %170 = arith.mulf %148, %169 : vector<16x16xf32>
    %171 = arith.addf %164, %170 : vector<16x16xf32>
    %c3_i32_61 = arith.constant 3 : i32
    %172 = arith.addi %143, %c3_i32_61 : i32
    %c0_i32_62 = arith.constant 0 : i32
    %173 = arith.addi %172, %c0_i32_62 : i32
    %174 = arith.index_cast %173 : i32 to index
    %175 = memref.load %arg3[%174] : memref<36xf32, #tpu.memory_space<smem>>
    %176 = vector.broadcast %175 : f32 to vector<16x16xf32>
    %177 = arith.mulf %151, %176 : vector<16x16xf32>
    %c3_i32_63 = arith.constant 3 : i32
    %178 = arith.addi %143, %c3_i32_63 : i32
    %c1_i32_64 = arith.constant 1 : i32
    %179 = arith.addi %178, %c1_i32_64 : i32
    %180 = arith.index_cast %179 : i32 to index
    %181 = memref.load %arg3[%180] : memref<36xf32, #tpu.memory_space<smem>>
    %182 = vector.broadcast %181 : f32 to vector<16x16xf32>
    %183 = arith.mulf %145, %182 : vector<16x16xf32>
    %184 = arith.addf %177, %183 : vector<16x16xf32>
    %c3_i32_65 = arith.constant 3 : i32
    %185 = arith.addi %143, %c3_i32_65 : i32
    %c2_i32_66 = arith.constant 2 : i32
    %186 = arith.addi %185, %c2_i32_66 : i32
    %187 = arith.index_cast %186 : i32 to index
    %188 = memref.load %arg3[%187] : memref<36xf32, #tpu.memory_space<smem>>
    %189 = vector.broadcast %188 : f32 to vector<16x16xf32>
    %190 = arith.mulf %148, %189 : vector<16x16xf32>
    %191 = arith.addf %184, %190 : vector<16x16xf32>
    %c6_i32_67 = arith.constant 6 : i32
    %192 = arith.addi %143, %c6_i32_67 : i32
    %c0_i32_68 = arith.constant 0 : i32
    %193 = arith.addi %192, %c0_i32_68 : i32
    %194 = arith.index_cast %193 : i32 to index
    %195 = memref.load %arg3[%194] : memref<36xf32, #tpu.memory_space<smem>>
    %196 = vector.broadcast %195 : f32 to vector<16x16xf32>
    %197 = arith.mulf %151, %196 : vector<16x16xf32>
    %c6_i32_69 = arith.constant 6 : i32
    %198 = arith.addi %143, %c6_i32_69 : i32
    %c1_i32_70 = arith.constant 1 : i32
    %199 = arith.addi %198, %c1_i32_70 : i32
    %200 = arith.index_cast %199 : i32 to index
    %201 = memref.load %arg3[%200] : memref<36xf32, #tpu.memory_space<smem>>
    %202 = vector.broadcast %201 : f32 to vector<16x16xf32>
    %203 = arith.mulf %145, %202 : vector<16x16xf32>
    %204 = arith.addf %197, %203 : vector<16x16xf32>
    %c6_i32_71 = arith.constant 6 : i32
    %205 = arith.addi %143, %c6_i32_71 : i32
    %c2_i32_72 = arith.constant 2 : i32
    %206 = arith.addi %205, %c2_i32_72 : i32
    %207 = arith.index_cast %206 : i32 to index
    %208 = memref.load %arg3[%207] : memref<36xf32, #tpu.memory_space<smem>>
    %209 = vector.broadcast %208 : f32 to vector<16x16xf32>
    %210 = arith.mulf %148, %209 : vector<16x16xf32>
    %211 = arith.addf %204, %210 : vector<16x16xf32>
    %c0_73 = arith.constant 0 : index
    %c1_74 = arith.constant 1 : index
    %c7_75 = arith.constant 7 : index
    %c0_76 = arith.constant 0 : index
    %212 = vector.load %arg5[%c0_73, %c1_74, %c7_75, %c0_76] : memref<1x4x8x16xf32, #tpu.memory_space<vmem>>, vector<1x1x1x16xf32>
    %213 = vector.shape_cast %212 : vector<1x1x1x16xf32> to vector<1x16xf32>
    %214 = vector.broadcast %1 : f32 to vector<1x16xf32>
    %215 = arith.mulf %213, %214 : vector<1x16xf32>
    %c0_77 = arith.constant 0 : index
    %c1_78 = arith.constant 1 : index
    %c0_79 = arith.constant 0 : index
    %c0_80 = arith.constant 0 : index
    %216 = vector.load %arg7[%c0_77, %c1_78, %c0_79, %c0_80] : memref<1x4x8x16xf32, #tpu.memory_space<vmem>>, vector<1x1x1x16xf32>
    %217 = vector.shape_cast %216 : vector<1x1x1x16xf32> to vector<1x16xf32>
    %218 = vector.broadcast %3 : f32 to vector<1x16xf32>
    %219 = arith.mulf %217, %218 : vector<1x16xf32>
    %cst_81 = arith.constant 0.000000e+00 : f32
    %220 = vector.broadcast %cst_81 : f32 to vector<1x1xf32>
    %221 = vector.extract_strided_slice %215 {offsets = [0, 1], sizes = [1, 15], strides = [1, 1]} : vector<1x16xf32> to vector<1x15xf32>
    %222 = tpu.concatenate %221, %220 in 1 : vector<1x15xf32>, vector<1x1xf32> -> vector<1x16xf32>
    %cst_82 = arith.constant 0.000000e+00 : f32
    %223 = vector.broadcast %cst_82 : f32 to vector<1x1xf32>
    %224 = vector.extract_strided_slice %215 {offsets = [0, 0], sizes = [1, 15], strides = [1, 1]} : vector<1x16xf32> to vector<1x15xf32>
    %225 = tpu.concatenate %223, %224 in 1 : vector<1x1xf32>, vector<1x15xf32> -> vector<1x16xf32>
    %c0_i32_83 = arith.constant 0 : i32
    %226 = arith.addi %143, %c0_i32_83 : i32
    %c0_i32_84 = arith.constant 0 : i32
    %227 = arith.addi %226, %c0_i32_84 : i32
    %228 = arith.index_cast %227 : i32 to index
    %229 = memref.load %arg3[%228] : memref<36xf32, #tpu.memory_space<smem>>
    %230 = vector.broadcast %229 : f32 to vector<1x16xf32>
    %231 = arith.mulf %225, %230 : vector<1x16xf32>
    %c0_i32_85 = arith.constant 0 : i32
    %232 = arith.addi %143, %c0_i32_85 : i32
    %c1_i32_86 = arith.constant 1 : i32
    %233 = arith.addi %232, %c1_i32_86 : i32
    %234 = arith.index_cast %233 : i32 to index
    %235 = memref.load %arg3[%234] : memref<36xf32, #tpu.memory_space<smem>>
    %236 = vector.broadcast %235 : f32 to vector<1x16xf32>
    %237 = arith.mulf %215, %236 : vector<1x16xf32>
    %238 = arith.addf %231, %237 : vector<1x16xf32>
    %c0_i32_87 = arith.constant 0 : i32
    %239 = arith.addi %143, %c0_i32_87 : i32
    %c2_i32_88 = arith.constant 2 : i32
    %240 = arith.addi %239, %c2_i32_88 : i32
    %241 = arith.index_cast %240 : i32 to index
    %242 = memref.load %arg3[%241] : memref<36xf32, #tpu.memory_space<smem>>
    %243 = vector.broadcast %242 : f32 to vector<1x16xf32>
    %244 = arith.mulf %222, %243 : vector<1x16xf32>
    %245 = arith.addf %238, %244 : vector<1x16xf32>
    %cst_89 = arith.constant 0.000000e+00 : f32
    %246 = vector.broadcast %cst_89 : f32 to vector<1x1xf32>
    %247 = vector.extract_strided_slice %219 {offsets = [0, 1], sizes = [1, 15], strides = [1, 1]} : vector<1x16xf32> to vector<1x15xf32>
    %248 = tpu.concatenate %247, %246 in 1 : vector<1x15xf32>, vector<1x1xf32> -> vector<1x16xf32>
    %cst_90 = arith.constant 0.000000e+00 : f32
    %249 = vector.broadcast %cst_90 : f32 to vector<1x1xf32>
    %250 = vector.extract_strided_slice %219 {offsets = [0, 0], sizes = [1, 15], strides = [1, 1]} : vector<1x16xf32> to vector<1x15xf32>
    %251 = tpu.concatenate %249, %250 in 1 : vector<1x1xf32>, vector<1x15xf32> -> vector<1x16xf32>
    %c6_i32_91 = arith.constant 6 : i32
    %252 = arith.addi %143, %c6_i32_91 : i32
    %c0_i32_92 = arith.constant 0 : i32
    %253 = arith.addi %252, %c0_i32_92 : i32
    %254 = arith.index_cast %253 : i32 to index
    %255 = memref.load %arg3[%254] : memref<36xf32, #tpu.memory_space<smem>>
    %256 = vector.broadcast %255 : f32 to vector<1x16xf32>
    %257 = arith.mulf %251, %256 : vector<1x16xf32>
    %c6_i32_93 = arith.constant 6 : i32
    %258 = arith.addi %143, %c6_i32_93 : i32
    %c1_i32_94 = arith.constant 1 : i32
    %259 = arith.addi %258, %c1_i32_94 : i32
    %260 = arith.index_cast %259 : i32 to index
    %261 = memref.load %arg3[%260] : memref<36xf32, #tpu.memory_space<smem>>
    %262 = vector.broadcast %261 : f32 to vector<1x16xf32>
    %263 = arith.mulf %219, %262 : vector<1x16xf32>
    %264 = arith.addf %257, %263 : vector<1x16xf32>
    %c6_i32_95 = arith.constant 6 : i32
    %265 = arith.addi %143, %c6_i32_95 : i32
    %c2_i32_96 = arith.constant 2 : i32
    %266 = arith.addi %265, %c2_i32_96 : i32
    %267 = arith.index_cast %266 : i32 to index
    %268 = memref.load %arg3[%267] : memref<36xf32, #tpu.memory_space<smem>>
    %269 = vector.broadcast %268 : f32 to vector<1x16xf32>
    %270 = arith.mulf %248, %269 : vector<1x16xf32>
    %271 = arith.addf %264, %270 : vector<1x16xf32>
    %272 = vector.extract_strided_slice %171 {offsets = [0, 0], sizes = [15, 16], strides = [1, 1]} : vector<16x16xf32> to vector<15x16xf32>
    %273 = tpu.concatenate %245, %272 in 0 : vector<1x16xf32>, vector<15x16xf32> -> vector<16x16xf32>
    %274 = vector.extract_strided_slice %211 {offsets = [1, 0], sizes = [15, 16], strides = [1, 1]} : vector<16x16xf32> to vector<15x16xf32>
    %275 = tpu.concatenate %274, %271 in 0 : vector<15x16xf32>, vector<1x16xf32> -> vector<16x16xf32>
    %276 = arith.addf %273, %191 : vector<16x16xf32>
    %277 = arith.addf %276, %275 : vector<16x16xf32>
    %c4_i32_97 = arith.constant 4 : i32
    %278 = arith.muli %arg2, %c4_i32_97 : i32
    %c2_i32_98 = arith.constant 2 : i32
    %279 = arith.addi %278, %c2_i32_98 : i32
    %c9_i32_99 = arith.constant 9 : i32
    %280 = arith.muli %279, %c9_i32_99 : i32
    %c0_100 = arith.constant 0 : index
    %c2 = arith.constant 2 : index
    %c0_101 = arith.constant 0 : index
    %c0_102 = arith.constant 0 : index
    %281 = vector.load %arg6[%c0_100, %c2, %c0_101, %c0_102] : memref<1x4x16x16xf32, #tpu.memory_space<vmem>>, vector<1x1x16x16xf32>
    %282 = vector.shape_cast %281 : vector<1x1x16x16xf32> to vector<16x16xf32>
    %cst_103 = arith.constant 0.000000e+00 : f32
    %283 = vector.broadcast %cst_103 : f32 to vector<16x1xf32>
    %284 = vector.extract_strided_slice %282 {offsets = [0, 1], sizes = [16, 15], strides = [1, 1]} : vector<16x16xf32> to vector<16x15xf32>
    %285 = tpu.concatenate %284, %283 in 1 : vector<16x15xf32>, vector<16x1xf32> -> vector<16x16xf32>
    %cst_104 = arith.constant 0.000000e+00 : f32
    %286 = vector.broadcast %cst_104 : f32 to vector<16x1xf32>
    %287 = vector.extract_strided_slice %282 {offsets = [0, 0], sizes = [16, 15], strides = [1, 1]} : vector<16x16xf32> to vector<16x15xf32>
    %288 = tpu.concatenate %286, %287 in 1 : vector<16x1xf32>, vector<16x15xf32> -> vector<16x16xf32>
    %c0_i32_105 = arith.constant 0 : i32
    %289 = arith.addi %280, %c0_i32_105 : i32
    %c0_i32_106 = arith.constant 0 : i32
    %290 = arith.addi %289, %c0_i32_106 : i32
    %291 = arith.index_cast %290 : i32 to index
    %292 = memref.load %arg3[%291] : memref<36xf32, #tpu.memory_space<smem>>
    %293 = vector.broadcast %292 : f32 to vector<16x16xf32>
    %294 = arith.mulf %288, %293 : vector<16x16xf32>
    %c0_i32_107 = arith.constant 0 : i32
    %295 = arith.addi %280, %c0_i32_107 : i32
    %c1_i32_108 = arith.constant 1 : i32
    %296 = arith.addi %295, %c1_i32_108 : i32
    %297 = arith.index_cast %296 : i32 to index
    %298 = memref.load %arg3[%297] : memref<36xf32, #tpu.memory_space<smem>>
    %299 = vector.broadcast %298 : f32 to vector<16x16xf32>
    %300 = arith.mulf %282, %299 : vector<16x16xf32>
    %301 = arith.addf %294, %300 : vector<16x16xf32>
    %c0_i32_109 = arith.constant 0 : i32
    %302 = arith.addi %280, %c0_i32_109 : i32
    %c2_i32_110 = arith.constant 2 : i32
    %303 = arith.addi %302, %c2_i32_110 : i32
    %304 = arith.index_cast %303 : i32 to index
    %305 = memref.load %arg3[%304] : memref<36xf32, #tpu.memory_space<smem>>
    %306 = vector.broadcast %305 : f32 to vector<16x16xf32>
    %307 = arith.mulf %285, %306 : vector<16x16xf32>
    %308 = arith.addf %301, %307 : vector<16x16xf32>
    %c3_i32_111 = arith.constant 3 : i32
    %309 = arith.addi %280, %c3_i32_111 : i32
    %c0_i32_112 = arith.constant 0 : i32
    %310 = arith.addi %309, %c0_i32_112 : i32
    %311 = arith.index_cast %310 : i32 to index
    %312 = memref.load %arg3[%311] : memref<36xf32, #tpu.memory_space<smem>>
    %313 = vector.broadcast %312 : f32 to vector<16x16xf32>
    %314 = arith.mulf %288, %313 : vector<16x16xf32>
    %c3_i32_113 = arith.constant 3 : i32
    %315 = arith.addi %280, %c3_i32_113 : i32
    %c1_i32_114 = arith.constant 1 : i32
    %316 = arith.addi %315, %c1_i32_114 : i32
    %317 = arith.index_cast %316 : i32 to index
    %318 = memref.load %arg3[%317] : memref<36xf32, #tpu.memory_space<smem>>
    %319 = vector.broadcast %318 : f32 to vector<16x16xf32>
    %320 = arith.mulf %282, %319 : vector<16x16xf32>
    %321 = arith.addf %314, %320 : vector<16x16xf32>
    %c3_i32_115 = arith.constant 3 : i32
    %322 = arith.addi %280, %c3_i32_115 : i32
    %c2_i32_116 = arith.constant 2 : i32
    %323 = arith.addi %322, %c2_i32_116 : i32
    %324 = arith.index_cast %323 : i32 to index
    %325 = memref.load %arg3[%324] : memref<36xf32, #tpu.memory_space<smem>>
    %326 = vector.broadcast %325 : f32 to vector<16x16xf32>
    %327 = arith.mulf %285, %326 : vector<16x16xf32>
    %328 = arith.addf %321, %327 : vector<16x16xf32>
    %c6_i32_117 = arith.constant 6 : i32
    %329 = arith.addi %280, %c6_i32_117 : i32
    %c0_i32_118 = arith.constant 0 : i32
    %330 = arith.addi %329, %c0_i32_118 : i32
    %331 = arith.index_cast %330 : i32 to index
    %332 = memref.load %arg3[%331] : memref<36xf32, #tpu.memory_space<smem>>
    %333 = vector.broadcast %332 : f32 to vector<16x16xf32>
    %334 = arith.mulf %288, %333 : vector<16x16xf32>
    %c6_i32_119 = arith.constant 6 : i32
    %335 = arith.addi %280, %c6_i32_119 : i32
    %c1_i32_120 = arith.constant 1 : i32
    %336 = arith.addi %335, %c1_i32_120 : i32
    %337 = arith.index_cast %336 : i32 to index
    %338 = memref.load %arg3[%337] : memref<36xf32, #tpu.memory_space<smem>>
    %339 = vector.broadcast %338 : f32 to vector<16x16xf32>
    %340 = arith.mulf %282, %339 : vector<16x16xf32>
    %341 = arith.addf %334, %340 : vector<16x16xf32>
    %c6_i32_121 = arith.constant 6 : i32
    %342 = arith.addi %280, %c6_i32_121 : i32
    %c2_i32_122 = arith.constant 2 : i32
    %343 = arith.addi %342, %c2_i32_122 : i32
    %344 = arith.index_cast %343 : i32 to index
    %345 = memref.load %arg3[%344] : memref<36xf32, #tpu.memory_space<smem>>
    %346 = vector.broadcast %345 : f32 to vector<16x16xf32>
    %347 = arith.mulf %285, %346 : vector<16x16xf32>
    %348 = arith.addf %341, %347 : vector<16x16xf32>
    %c0_123 = arith.constant 0 : index
    %c2_124 = arith.constant 2 : index
    %c7_125 = arith.constant 7 : index
    %c0_126 = arith.constant 0 : index
    %349 = vector.load %arg5[%c0_123, %c2_124, %c7_125, %c0_126] : memref<1x4x8x16xf32, #tpu.memory_space<vmem>>, vector<1x1x1x16xf32>
    %350 = vector.shape_cast %349 : vector<1x1x1x16xf32> to vector<1x16xf32>
    %351 = vector.broadcast %1 : f32 to vector<1x16xf32>
    %352 = arith.mulf %350, %351 : vector<1x16xf32>
    %c0_127 = arith.constant 0 : index
    %c2_128 = arith.constant 2 : index
    %c0_129 = arith.constant 0 : index
    %c0_130 = arith.constant 0 : index
    %353 = vector.load %arg7[%c0_127, %c2_128, %c0_129, %c0_130] : memref<1x4x8x16xf32, #tpu.memory_space<vmem>>, vector<1x1x1x16xf32>
    %354 = vector.shape_cast %353 : vector<1x1x1x16xf32> to vector<1x16xf32>
    %355 = vector.broadcast %3 : f32 to vector<1x16xf32>
    %356 = arith.mulf %354, %355 : vector<1x16xf32>
    %cst_131 = arith.constant 0.000000e+00 : f32
    %357 = vector.broadcast %cst_131 : f32 to vector<1x1xf32>
    %358 = vector.extract_strided_slice %352 {offsets = [0, 1], sizes = [1, 15], strides = [1, 1]} : vector<1x16xf32> to vector<1x15xf32>
    %359 = tpu.concatenate %358, %357 in 1 : vector<1x15xf32>, vector<1x1xf32> -> vector<1x16xf32>
    %cst_132 = arith.constant 0.000000e+00 : f32
    %360 = vector.broadcast %cst_132 : f32 to vector<1x1xf32>
    %361 = vector.extract_strided_slice %352 {offsets = [0, 0], sizes = [1, 15], strides = [1, 1]} : vector<1x16xf32> to vector<1x15xf32>
    %362 = tpu.concatenate %360, %361 in 1 : vector<1x1xf32>, vector<1x15xf32> -> vector<1x16xf32>
    %c0_i32_133 = arith.constant 0 : i32
    %363 = arith.addi %280, %c0_i32_133 : i32
    %c0_i32_134 = arith.constant 0 : i32
    %364 = arith.addi %363, %c0_i32_134 : i32
    %365 = arith.index_cast %364 : i32 to index
    %366 = memref.load %arg3[%365] : memref<36xf32, #tpu.memory_space<smem>>
    %367 = vector.broadcast %366 : f32 to vector<1x16xf32>
    %368 = arith.mulf %362, %367 : vector<1x16xf32>
    %c0_i32_135 = arith.constant 0 : i32
    %369 = arith.addi %280, %c0_i32_135 : i32
    %c1_i32_136 = arith.constant 1 : i32
    %370 = arith.addi %369, %c1_i32_136 : i32
    %371 = arith.index_cast %370 : i32 to index
    %372 = memref.load %arg3[%371] : memref<36xf32, #tpu.memory_space<smem>>
    %373 = vector.broadcast %372 : f32 to vector<1x16xf32>
    %374 = arith.mulf %352, %373 : vector<1x16xf32>
    %375 = arith.addf %368, %374 : vector<1x16xf32>
    %c0_i32_137 = arith.constant 0 : i32
    %376 = arith.addi %280, %c0_i32_137 : i32
    %c2_i32_138 = arith.constant 2 : i32
    %377 = arith.addi %376, %c2_i32_138 : i32
    %378 = arith.index_cast %377 : i32 to index
    %379 = memref.load %arg3[%378] : memref<36xf32, #tpu.memory_space<smem>>
    %380 = vector.broadcast %379 : f32 to vector<1x16xf32>
    %381 = arith.mulf %359, %380 : vector<1x16xf32>
    %382 = arith.addf %375, %381 : vector<1x16xf32>
    %cst_139 = arith.constant 0.000000e+00 : f32
    %383 = vector.broadcast %cst_139 : f32 to vector<1x1xf32>
    %384 = vector.extract_strided_slice %356 {offsets = [0, 1], sizes = [1, 15], strides = [1, 1]} : vector<1x16xf32> to vector<1x15xf32>
    %385 = tpu.concatenate %384, %383 in 1 : vector<1x15xf32>, vector<1x1xf32> -> vector<1x16xf32>
    %cst_140 = arith.constant 0.000000e+00 : f32
    %386 = vector.broadcast %cst_140 : f32 to vector<1x1xf32>
    %387 = vector.extract_strided_slice %356 {offsets = [0, 0], sizes = [1, 15], strides = [1, 1]} : vector<1x16xf32> to vector<1x15xf32>
    %388 = tpu.concatenate %386, %387 in 1 : vector<1x1xf32>, vector<1x15xf32> -> vector<1x16xf32>
    %c6_i32_141 = arith.constant 6 : i32
    %389 = arith.addi %280, %c6_i32_141 : i32
    %c0_i32_142 = arith.constant 0 : i32
    %390 = arith.addi %389, %c0_i32_142 : i32
    %391 = arith.index_cast %390 : i32 to index
    %392 = memref.load %arg3[%391] : memref<36xf32, #tpu.memory_space<smem>>
    %393 = vector.broadcast %392 : f32 to vector<1x16xf32>
    %394 = arith.mulf %388, %393 : vector<1x16xf32>
    %c6_i32_143 = arith.constant 6 : i32
    %395 = arith.addi %280, %c6_i32_143 : i32
    %c1_i32_144 = arith.constant 1 : i32
    %396 = arith.addi %395, %c1_i32_144 : i32
    %397 = arith.index_cast %396 : i32 to index
    %398 = memref.load %arg3[%397] : memref<36xf32, #tpu.memory_space<smem>>
    %399 = vector.broadcast %398 : f32 to vector<1x16xf32>
    %400 = arith.mulf %356, %399 : vector<1x16xf32>
    %401 = arith.addf %394, %400 : vector<1x16xf32>
    %c6_i32_145 = arith.constant 6 : i32
    %402 = arith.addi %280, %c6_i32_145 : i32
    %c2_i32_146 = arith.constant 2 : i32
    %403 = arith.addi %402, %c2_i32_146 : i32
    %404 = arith.index_cast %403 : i32 to index
    %405 = memref.load %arg3[%404] : memref<36xf32, #tpu.memory_space<smem>>
    %406 = vector.broadcast %405 : f32 to vector<1x16xf32>
    %407 = arith.mulf %385, %406 : vector<1x16xf32>
    %408 = arith.addf %401, %407 : vector<1x16xf32>
    %409 = vector.extract_strided_slice %308 {offsets = [0, 0], sizes = [15, 16], strides = [1, 1]} : vector<16x16xf32> to vector<15x16xf32>
    %410 = tpu.concatenate %382, %409 in 0 : vector<1x16xf32>, vector<15x16xf32> -> vector<16x16xf32>
    %411 = vector.extract_strided_slice %348 {offsets = [1, 0], sizes = [15, 16], strides = [1, 1]} : vector<16x16xf32> to vector<15x16xf32>
    %412 = tpu.concatenate %411, %408 in 0 : vector<15x16xf32>, vector<1x16xf32> -> vector<16x16xf32>
    %413 = arith.addf %410, %328 : vector<16x16xf32>
    %414 = arith.addf %413, %412 : vector<16x16xf32>
    %c4_i32_147 = arith.constant 4 : i32
    %415 = arith.muli %arg2, %c4_i32_147 : i32
    %c3_i32_148 = arith.constant 3 : i32
    %416 = arith.addi %415, %c3_i32_148 : i32
    %c9_i32_149 = arith.constant 9 : i32
    %417 = arith.muli %416, %c9_i32_149 : i32
    %c0_150 = arith.constant 0 : index
    %c3 = arith.constant 3 : index
    %c0_151 = arith.constant 0 : index
    %c0_152 = arith.constant 0 : index
    %418 = vector.load %arg6[%c0_150, %c3, %c0_151, %c0_152] : memref<1x4x16x16xf32, #tpu.memory_space<vmem>>, vector<1x1x16x16xf32>
    %419 = vector.shape_cast %418 : vector<1x1x16x16xf32> to vector<16x16xf32>
    %cst_153 = arith.constant 0.000000e+00 : f32
    %420 = vector.broadcast %cst_153 : f32 to vector<16x1xf32>
    %421 = vector.extract_strided_slice %419 {offsets = [0, 1], sizes = [16, 15], strides = [1, 1]} : vector<16x16xf32> to vector<16x15xf32>
    %422 = tpu.concatenate %421, %420 in 1 : vector<16x15xf32>, vector<16x1xf32> -> vector<16x16xf32>
    %cst_154 = arith.constant 0.000000e+00 : f32
    %423 = vector.broadcast %cst_154 : f32 to vector<16x1xf32>
    %424 = vector.extract_strided_slice %419 {offsets = [0, 0], sizes = [16, 15], strides = [1, 1]} : vector<16x16xf32> to vector<16x15xf32>
    %425 = tpu.concatenate %423, %424 in 1 : vector<16x1xf32>, vector<16x15xf32> -> vector<16x16xf32>
    %c0_i32_155 = arith.constant 0 : i32
    %426 = arith.addi %417, %c0_i32_155 : i32
    %c0_i32_156 = arith.constant 0 : i32
    %427 = arith.addi %426, %c0_i32_156 : i32
    %428 = arith.index_cast %427 : i32 to index
    %429 = memref.load %arg3[%428] : memref<36xf32, #tpu.memory_space<smem>>
    %430 = vector.broadcast %429 : f32 to vector<16x16xf32>
    %431 = arith.mulf %425, %430 : vector<16x16xf32>
    %c0_i32_157 = arith.constant 0 : i32
    %432 = arith.addi %417, %c0_i32_157 : i32
    %c1_i32_158 = arith.constant 1 : i32
    %433 = arith.addi %432, %c1_i32_158 : i32
    %434 = arith.index_cast %433 : i32 to index
    %435 = memref.load %arg3[%434] : memref<36xf32, #tpu.memory_space<smem>>
    %436 = vector.broadcast %435 : f32 to vector<16x16xf32>
    %437 = arith.mulf %419, %436 : vector<16x16xf32>
    %438 = arith.addf %431, %437 : vector<16x16xf32>
    %c0_i32_159 = arith.constant 0 : i32
    %439 = arith.addi %417, %c0_i32_159 : i32
    %c2_i32_160 = arith.constant 2 : i32
    %440 = arith.addi %439, %c2_i32_160 : i32
    %441 = arith.index_cast %440 : i32 to index
    %442 = memref.load %arg3[%441] : memref<36xf32, #tpu.memory_space<smem>>
    %443 = vector.broadcast %442 : f32 to vector<16x16xf32>
    %444 = arith.mulf %422, %443 : vector<16x16xf32>
    %445 = arith.addf %438, %444 : vector<16x16xf32>
    %c3_i32_161 = arith.constant 3 : i32
    %446 = arith.addi %417, %c3_i32_161 : i32
    %c0_i32_162 = arith.constant 0 : i32
    %447 = arith.addi %446, %c0_i32_162 : i32
    %448 = arith.index_cast %447 : i32 to index
    %449 = memref.load %arg3[%448] : memref<36xf32, #tpu.memory_space<smem>>
    %450 = vector.broadcast %449 : f32 to vector<16x16xf32>
    %451 = arith.mulf %425, %450 : vector<16x16xf32>
    %c3_i32_163 = arith.constant 3 : i32
    %452 = arith.addi %417, %c3_i32_163 : i32
    %c1_i32_164 = arith.constant 1 : i32
    %453 = arith.addi %452, %c1_i32_164 : i32
    %454 = arith.index_cast %453 : i32 to index
    %455 = memref.load %arg3[%454] : memref<36xf32, #tpu.memory_space<smem>>
    %456 = vector.broadcast %455 : f32 to vector<16x16xf32>
    %457 = arith.mulf %419, %456 : vector<16x16xf32>
    %458 = arith.addf %451, %457 : vector<16x16xf32>
    %c3_i32_165 = arith.constant 3 : i32
    %459 = arith.addi %417, %c3_i32_165 : i32
    %c2_i32_166 = arith.constant 2 : i32
    %460 = arith.addi %459, %c2_i32_166 : i32
    %461 = arith.index_cast %460 : i32 to index
    %462 = memref.load %arg3[%461] : memref<36xf32, #tpu.memory_space<smem>>
    %463 = vector.broadcast %462 : f32 to vector<16x16xf32>
    %464 = arith.mulf %422, %463 : vector<16x16xf32>
    %465 = arith.addf %458, %464 : vector<16x16xf32>
    %c6_i32_167 = arith.constant 6 : i32
    %466 = arith.addi %417, %c6_i32_167 : i32
    %c0_i32_168 = arith.constant 0 : i32
    %467 = arith.addi %466, %c0_i32_168 : i32
    %468 = arith.index_cast %467 : i32 to index
    %469 = memref.load %arg3[%468] : memref<36xf32, #tpu.memory_space<smem>>
    %470 = vector.broadcast %469 : f32 to vector<16x16xf32>
    %471 = arith.mulf %425, %470 : vector<16x16xf32>
    %c6_i32_169 = arith.constant 6 : i32
    %472 = arith.addi %417, %c6_i32_169 : i32
    %c1_i32_170 = arith.constant 1 : i32
    %473 = arith.addi %472, %c1_i32_170 : i32
    %474 = arith.index_cast %473 : i32 to index
    %475 = memref.load %arg3[%474] : memref<36xf32, #tpu.memory_space<smem>>
    %476 = vector.broadcast %475 : f32 to vector<16x16xf32>
    %477 = arith.mulf %419, %476 : vector<16x16xf32>
    %478 = arith.addf %471, %477 : vector<16x16xf32>
    %c6_i32_171 = arith.constant 6 : i32
    %479 = arith.addi %417, %c6_i32_171 : i32
    %c2_i32_172 = arith.constant 2 : i32
    %480 = arith.addi %479, %c2_i32_172 : i32
    %481 = arith.index_cast %480 : i32 to index
    %482 = memref.load %arg3[%481] : memref<36xf32, #tpu.memory_space<smem>>
    %483 = vector.broadcast %482 : f32 to vector<16x16xf32>
    %484 = arith.mulf %422, %483 : vector<16x16xf32>
    %485 = arith.addf %478, %484 : vector<16x16xf32>
    %c0_173 = arith.constant 0 : index
    %c3_174 = arith.constant 3 : index
    %c7_175 = arith.constant 7 : index
    %c0_176 = arith.constant 0 : index
    %486 = vector.load %arg5[%c0_173, %c3_174, %c7_175, %c0_176] : memref<1x4x8x16xf32, #tpu.memory_space<vmem>>, vector<1x1x1x16xf32>
    %487 = vector.shape_cast %486 : vector<1x1x1x16xf32> to vector<1x16xf32>
    %488 = vector.broadcast %1 : f32 to vector<1x16xf32>
    %489 = arith.mulf %487, %488 : vector<1x16xf32>
    %c0_177 = arith.constant 0 : index
    %c3_178 = arith.constant 3 : index
    %c0_179 = arith.constant 0 : index
    %c0_180 = arith.constant 0 : index
    %490 = vector.load %arg7[%c0_177, %c3_178, %c0_179, %c0_180] : memref<1x4x8x16xf32, #tpu.memory_space<vmem>>, vector<1x1x1x16xf32>
    %491 = vector.shape_cast %490 : vector<1x1x1x16xf32> to vector<1x16xf32>
    %492 = vector.broadcast %3 : f32 to vector<1x16xf32>
    %493 = arith.mulf %491, %492 : vector<1x16xf32>
    %cst_181 = arith.constant 0.000000e+00 : f32
    %494 = vector.broadcast %cst_181 : f32 to vector<1x1xf32>
    %495 = vector.extract_strided_slice %489 {offsets = [0, 1], sizes = [1, 15], strides = [1, 1]} : vector<1x16xf32> to vector<1x15xf32>
    %496 = tpu.concatenate %495, %494 in 1 : vector<1x15xf32>, vector<1x1xf32> -> vector<1x16xf32>
    %cst_182 = arith.constant 0.000000e+00 : f32
    %497 = vector.broadcast %cst_182 : f32 to vector<1x1xf32>
    %498 = vector.extract_strided_slice %489 {offsets = [0, 0], sizes = [1, 15], strides = [1, 1]} : vector<1x16xf32> to vector<1x15xf32>
    %499 = tpu.concatenate %497, %498 in 1 : vector<1x1xf32>, vector<1x15xf32> -> vector<1x16xf32>
    %c0_i32_183 = arith.constant 0 : i32
    %500 = arith.addi %417, %c0_i32_183 : i32
    %c0_i32_184 = arith.constant 0 : i32
    %501 = arith.addi %500, %c0_i32_184 : i32
    %502 = arith.index_cast %501 : i32 to index
    %503 = memref.load %arg3[%502] : memref<36xf32, #tpu.memory_space<smem>>
    %504 = vector.broadcast %503 : f32 to vector<1x16xf32>
    %505 = arith.mulf %499, %504 : vector<1x16xf32>
    %c0_i32_185 = arith.constant 0 : i32
    %506 = arith.addi %417, %c0_i32_185 : i32
    %c1_i32_186 = arith.constant 1 : i32
    %507 = arith.addi %506, %c1_i32_186 : i32
    %508 = arith.index_cast %507 : i32 to index
    %509 = memref.load %arg3[%508] : memref<36xf32, #tpu.memory_space<smem>>
    %510 = vector.broadcast %509 : f32 to vector<1x16xf32>
    %511 = arith.mulf %489, %510 : vector<1x16xf32>
    %512 = arith.addf %505, %511 : vector<1x16xf32>
    %c0_i32_187 = arith.constant 0 : i32
    %513 = arith.addi %417, %c0_i32_187 : i32
    %c2_i32_188 = arith.constant 2 : i32
    %514 = arith.addi %513, %c2_i32_188 : i32
    %515 = arith.index_cast %514 : i32 to index
    %516 = memref.load %arg3[%515] : memref<36xf32, #tpu.memory_space<smem>>
    %517 = vector.broadcast %516 : f32 to vector<1x16xf32>
    %518 = arith.mulf %496, %517 : vector<1x16xf32>
    %519 = arith.addf %512, %518 : vector<1x16xf32>
    %cst_189 = arith.constant 0.000000e+00 : f32
    %520 = vector.broadcast %cst_189 : f32 to vector<1x1xf32>
    %521 = vector.extract_strided_slice %493 {offsets = [0, 1], sizes = [1, 15], strides = [1, 1]} : vector<1x16xf32> to vector<1x15xf32>
    %522 = tpu.concatenate %521, %520 in 1 : vector<1x15xf32>, vector<1x1xf32> -> vector<1x16xf32>
    %cst_190 = arith.constant 0.000000e+00 : f32
    %523 = vector.broadcast %cst_190 : f32 to vector<1x1xf32>
    %524 = vector.extract_strided_slice %493 {offsets = [0, 0], sizes = [1, 15], strides = [1, 1]} : vector<1x16xf32> to vector<1x15xf32>
    %525 = tpu.concatenate %523, %524 in 1 : vector<1x1xf32>, vector<1x15xf32> -> vector<1x16xf32>
    %c6_i32_191 = arith.constant 6 : i32
    %526 = arith.addi %417, %c6_i32_191 : i32
    %c0_i32_192 = arith.constant 0 : i32
    %527 = arith.addi %526, %c0_i32_192 : i32
    %528 = arith.index_cast %527 : i32 to index
    %529 = memref.load %arg3[%528] : memref<36xf32, #tpu.memory_space<smem>>
    %530 = vector.broadcast %529 : f32 to vector<1x16xf32>
    %531 = arith.mulf %525, %530 : vector<1x16xf32>
    %c6_i32_193 = arith.constant 6 : i32
    %532 = arith.addi %417, %c6_i32_193 : i32
    %c1_i32_194 = arith.constant 1 : i32
    %533 = arith.addi %532, %c1_i32_194 : i32
    %534 = arith.index_cast %533 : i32 to index
    %535 = memref.load %arg3[%534] : memref<36xf32, #tpu.memory_space<smem>>
    %536 = vector.broadcast %535 : f32 to vector<1x16xf32>
    %537 = arith.mulf %493, %536 : vector<1x16xf32>
    %538 = arith.addf %531, %537 : vector<1x16xf32>
    %c6_i32_195 = arith.constant 6 : i32
    %539 = arith.addi %417, %c6_i32_195 : i32
    %c2_i32_196 = arith.constant 2 : i32
    %540 = arith.addi %539, %c2_i32_196 : i32
    %541 = arith.index_cast %540 : i32 to index
    %542 = memref.load %arg3[%541] : memref<36xf32, #tpu.memory_space<smem>>
    %543 = vector.broadcast %542 : f32 to vector<1x16xf32>
    %544 = arith.mulf %522, %543 : vector<1x16xf32>
    %545 = arith.addf %538, %544 : vector<1x16xf32>
    %546 = vector.extract_strided_slice %445 {offsets = [0, 0], sizes = [15, 16], strides = [1, 1]} : vector<16x16xf32> to vector<15x16xf32>
    %547 = tpu.concatenate %519, %546 in 0 : vector<1x16xf32>, vector<15x16xf32> -> vector<16x16xf32>
    %548 = vector.extract_strided_slice %485 {offsets = [1, 0], sizes = [15, 16], strides = [1, 1]} : vector<16x16xf32> to vector<15x16xf32>
    %549 = tpu.concatenate %548, %545 in 0 : vector<15x16xf32>, vector<1x16xf32> -> vector<16x16xf32>
    %550 = arith.addf %547, %465 : vector<16x16xf32>
    %551 = arith.addf %550, %549 : vector<16x16xf32>
    %c4_i32_197 = arith.constant 4 : i32
    %552 = arith.muli %arg2, %c4_i32_197 : i32
    %c0_i32_198 = arith.constant 0 : i32
    %553 = arith.addi %c0_i32_198, %552 : i32
    %c0_i32_199 = arith.constant 0 : i32
    %554 = arith.addi %553, %c0_i32_199 : i32
    %555 = arith.index_cast %554 : i32 to index
    %556 = memref.load %arg4[%555] : memref<32xf32, #tpu.memory_space<smem>>
    %557 = vector.broadcast %556 : f32 to vector<16x16xf32>
    %558 = arith.mulf %140, %557 : vector<16x16xf32>
    %c1_i32_200 = arith.constant 1 : i32
    %559 = arith.addi %553, %c1_i32_200 : i32
    %560 = arith.index_cast %559 : i32 to index
    %561 = memref.load %arg4[%560] : memref<32xf32, #tpu.memory_space<smem>>
    %562 = vector.broadcast %561 : f32 to vector<16x16xf32>
    %563 = arith.mulf %277, %562 : vector<16x16xf32>
    %564 = arith.addf %558, %563 : vector<16x16xf32>
    %c2_i32_201 = arith.constant 2 : i32
    %565 = arith.addi %553, %c2_i32_201 : i32
    %566 = arith.index_cast %565 : i32 to index
    %567 = memref.load %arg4[%566] : memref<32xf32, #tpu.memory_space<smem>>
    %568 = vector.broadcast %567 : f32 to vector<16x16xf32>
    %569 = arith.mulf %414, %568 : vector<16x16xf32>
    %570 = arith.addf %564, %569 : vector<16x16xf32>
    %c3_i32_202 = arith.constant 3 : i32
    %571 = arith.addi %553, %c3_i32_202 : i32
    %572 = arith.index_cast %571 : i32 to index
    %573 = memref.load %arg4[%572] : memref<32xf32, #tpu.memory_space<smem>>
    %574 = vector.broadcast %573 : f32 to vector<16x16xf32>
    %575 = arith.mulf %551, %574 : vector<16x16xf32>
    %576 = arith.addf %570, %575 : vector<16x16xf32>
    %c0_203 = arith.constant 0 : index
    %c0_204 = arith.constant 0 : index
    %c0_205 = arith.constant 0 : index
    %c0_206 = arith.constant 0 : index
    %577 = vector.load %arg8[%c0_203, %c0_204, %c0_205, %c0_206] : memref<1x8x16x16xf32, #tpu.memory_space<vmem>>, vector<1x1x16x16xf32>
    %578 = vector.shape_cast %577 : vector<1x1x16x16xf32> to vector<16x16xf32>
    %579 = vector.shape_cast %576 : vector<16x16xf32> to vector<1x1x16x16xf32>
    tpu.vector_store %arg8[%c0_203, %c0_204, %c0_205, %c0_206], %579 {strides = array<i32>} : memref<1x8x16x16xf32, #tpu.memory_space<vmem>>, vector<1x1x16x16xf32>,
    %c4_i32_207 = arith.constant 4 : i32
    %580 = arith.muli %arg2, %c4_i32_207 : i32
    %c4_i32_208 = arith.constant 4 : i32
    %581 = arith.addi %c4_i32_208, %580 : i32
    %c0_i32_209 = arith.constant 0 : i32
    %582 = arith.addi %581, %c0_i32_209 : i32
    %583 = arith.index_cast %582 : i32 to index
    %584 = memref.load %arg4[%583] : memref<32xf32, #tpu.memory_space<smem>>
    %585 = vector.broadcast %584 : f32 to vector<16x16xf32>
    %586 = arith.mulf %140, %585 : vector<16x16xf32>
    %c1_i32_210 = arith.constant 1 : i32
    %587 = arith.addi %581, %c1_i32_210 : i32
    %588 = arith.index_cast %587 : i32 to index
    %589 = memref.load %arg4[%588] : memref<32xf32, #tpu.memory_space<smem>>
    %590 = vector.broadcast %589 : f32 to vector<16x16xf32>
    %591 = arith.mulf %277, %590 : vector<16x16xf32>
    %592 = arith.addf %586, %591 : vector<16x16xf32>
    %c2_i32_211 = arith.constant 2 : i32
    %593 = arith.addi %581, %c2_i32_211 : i32
    %594 = arith.index_cast %593 : i32 to index
    %595 = memref.load %arg4[%594] : memref<32xf32, #tpu.memory_space<smem>>
    %596 = vector.broadcast %595 : f32 to vector<16x16xf32>
    %597 = arith.mulf %414, %596 : vector<16x16xf32>
    %598 = arith.addf %592, %597 : vector<16x16xf32>
    %c3_i32_212 = arith.constant 3 : i32
    %599 = arith.addi %581, %c3_i32_212 : i32
    %600 = arith.index_cast %599 : i32 to index
    %601 = memref.load %arg4[%600] : memref<32xf32, #tpu.memory_space<smem>>
    %602 = vector.broadcast %601 : f32 to vector<16x16xf32>
    %603 = arith.mulf %551, %602 : vector<16x16xf32>
    %604 = arith.addf %598, %603 : vector<16x16xf32>
    %c0_213 = arith.constant 0 : index
    %c1_214 = arith.constant 1 : index
    %c0_215 = arith.constant 0 : index
    %c0_216 = arith.constant 0 : index
    %605 = vector.load %arg8[%c0_213, %c1_214, %c0_215, %c0_216] : memref<1x8x16x16xf32, #tpu.memory_space<vmem>>, vector<1x1x16x16xf32>
    %606 = vector.shape_cast %605 : vector<1x1x16x16xf32> to vector<16x16xf32>
    %607 = vector.shape_cast %604 : vector<16x16xf32> to vector<1x1x16x16xf32>
    tpu.vector_store %arg8[%c0_213, %c1_214, %c0_215, %c0_216], %607 {strides = array<i32>} : memref<1x8x16x16xf32, #tpu.memory_space<vmem>>, vector<1x1x16x16xf32>,
    %c4_i32_217 = arith.constant 4 : i32
    %608 = arith.muli %arg2, %c4_i32_217 : i32
    %c8_i32 = arith.constant 8 : i32
    %609 = arith.addi %c8_i32, %608 : i32
    %c0_i32_218 = arith.constant 0 : i32
    %610 = arith.addi %609, %c0_i32_218 : i32
    %611 = arith.index_cast %610 : i32 to index
    %612 = memref.load %arg4[%611] : memref<32xf32, #tpu.memory_space<smem>>
    %613 = vector.broadcast %612 : f32 to vector<16x16xf32>
    %614 = arith.mulf %140, %613 : vector<16x16xf32>
    %c1_i32_219 = arith.constant 1 : i32
    %615 = arith.addi %609, %c1_i32_219 : i32
    %616 = arith.index_cast %615 : i32 to index
    %617 = memref.load %arg4[%616] : memref<32xf32, #tpu.memory_space<smem>>
    %618 = vector.broadcast %617 : f32 to vector<16x16xf32>
    %619 = arith.mulf %277, %618 : vector<16x16xf32>
    %620 = arith.addf %614, %619 : vector<16x16xf32>
    %c2_i32_220 = arith.constant 2 : i32
    %621 = arith.addi %609, %c2_i32_220 : i32
    %622 = arith.index_cast %621 : i32 to index
    %623 = memref.load %arg4[%622] : memref<32xf32, #tpu.memory_space<smem>>
    %624 = vector.broadcast %623 : f32 to vector<16x16xf32>
    %625 = arith.mulf %414, %624 : vector<16x16xf32>
    %626 = arith.addf %620, %625 : vector<16x16xf32>
    %c3_i32_221 = arith.constant 3 : i32
    %627 = arith.addi %609, %c3_i32_221 : i32
    %628 = arith.index_cast %627 : i32 to index
    %629 = memref.load %arg4[%628] : memref<32xf32, #tpu.memory_space<smem>>
    %630 = vector.broadcast %629 : f32 to vector<16x16xf32>
    %631 = arith.mulf %551, %630 : vector<16x16xf32>
    %632 = arith.addf %626, %631 : vector<16x16xf32>
    %c0_222 = arith.constant 0 : index
    %c2_223 = arith.constant 2 : index
    %c0_224 = arith.constant 0 : index
    %c0_225 = arith.constant 0 : index
    %633 = vector.load %arg8[%c0_222, %c2_223, %c0_224, %c0_225] : memref<1x8x16x16xf32, #tpu.memory_space<vmem>>, vector<1x1x16x16xf32>
    %634 = vector.shape_cast %633 : vector<1x1x16x16xf32> to vector<16x16xf32>
    %635 = vector.shape_cast %632 : vector<16x16xf32> to vector<1x1x16x16xf32>
    tpu.vector_store %arg8[%c0_222, %c2_223, %c0_224, %c0_225], %635 {strides = array<i32>} : memref<1x8x16x16xf32, #tpu.memory_space<vmem>>, vector<1x1x16x16xf32>,
    %c4_i32_226 = arith.constant 4 : i32
    %636 = arith.muli %arg2, %c4_i32_226 : i32
    %c12_i32 = arith.constant 12 : i32
    %637 = arith.addi %c12_i32, %636 : i32
    %c0_i32_227 = arith.constant 0 : i32
    %638 = arith.addi %637, %c0_i32_227 : i32
    %639 = arith.index_cast %638 : i32 to index
    %640 = memref.load %arg4[%639] : memref<32xf32, #tpu.memory_space<smem>>
    %641 = vector.broadcast %640 : f32 to vector<16x16xf32>
    %642 = arith.mulf %140, %641 : vector<16x16xf32>
    %c1_i32_228 = arith.constant 1 : i32
    %643 = arith.addi %637, %c1_i32_228 : i32
    %644 = arith.index_cast %643 : i32 to index
    %645 = memref.load %arg4[%644] : memref<32xf32, #tpu.memory_space<smem>>
    %646 = vector.broadcast %645 : f32 to vector<16x16xf32>
    %647 = arith.mulf %277, %646 : vector<16x16xf32>
    %648 = arith.addf %642, %647 : vector<16x16xf32>
    %c2_i32_229 = arith.constant 2 : i32
    %649 = arith.addi %637, %c2_i32_229 : i32
    %650 = arith.index_cast %649 : i32 to index
    %651 = memref.load %arg4[%650] : memref<32xf32, #tpu.memory_space<smem>>
    %652 = vector.broadcast %651 : f32 to vector<16x16xf32>
    %653 = arith.mulf %414, %652 : vector<16x16xf32>
    %654 = arith.addf %648, %653 : vector<16x16xf32>
    %c3_i32_230 = arith.constant 3 : i32
    %655 = arith.addi %637, %c3_i32_230 : i32
    %656 = arith.index_cast %655 : i32 to index
    %657 = memref.load %arg4[%656] : memref<32xf32, #tpu.memory_space<smem>>
    %658 = vector.broadcast %657 : f32 to vector<16x16xf32>
    %659 = arith.mulf %551, %658 : vector<16x16xf32>
    %660 = arith.addf %654, %659 : vector<16x16xf32>
    %c0_231 = arith.constant 0 : index
    %c3_232 = arith.constant 3 : index
    %c0_233 = arith.constant 0 : index
    %c0_234 = arith.constant 0 : index
    %661 = vector.load %arg8[%c0_231, %c3_232, %c0_233, %c0_234] : memref<1x8x16x16xf32, #tpu.memory_space<vmem>>, vector<1x1x16x16xf32>
    %662 = vector.shape_cast %661 : vector<1x1x16x16xf32> to vector<16x16xf32>
    %663 = vector.shape_cast %660 : vector<16x16xf32> to vector<1x1x16x16xf32>
    tpu.vector_store %arg8[%c0_231, %c3_232, %c0_233, %c0_234], %663 {strides = array<i32>} : memref<1x8x16x16xf32, #tpu.memory_space<vmem>>, vector<1x1x16x16xf32>,
    %c4_i32_235 = arith.constant 4 : i32
    %664 = arith.muli %arg2, %c4_i32_235 : i32
    %c16_i32 = arith.constant 16 : i32
    %665 = arith.addi %c16_i32, %664 : i32
    %c0_i32_236 = arith.constant 0 : i32
    %666 = arith.addi %665, %c0_i32_236 : i32
    %667 = arith.index_cast %666 : i32 to index
    %668 = memref.load %arg4[%667] : memref<32xf32, #tpu.memory_space<smem>>
    %669 = vector.broadcast %668 : f32 to vector<16x16xf32>
    %670 = arith.mulf %140, %669 : vector<16x16xf32>
    %c1_i32_237 = arith.constant 1 : i32
    %671 = arith.addi %665, %c1_i32_237 : i32
    %672 = arith.index_cast %671 : i32 to index
    %673 = memref.load %arg4[%672] : memref<32xf32, #tpu.memory_space<smem>>
    %674 = vector.broadcast %673 : f32 to vector<16x16xf32>
    %675 = arith.mulf %277, %674 : vector<16x16xf32>
    %676 = arith.addf %670, %675 : vector<16x16xf32>
    %c2_i32_238 = arith.constant 2 : i32
    %677 = arith.addi %665, %c2_i32_238 : i32
    %678 = arith.index_cast %677 : i32 to index
    %679 = memref.load %arg4[%678] : memref<32xf32, #tpu.memory_space<smem>>
    %680 = vector.broadcast %679 : f32 to vector<16x16xf32>
    %681 = arith.mulf %414, %680 : vector<16x16xf32>
    %682 = arith.addf %676, %681 : vector<16x16xf32>
    %c3_i32_239 = arith.constant 3 : i32
    %683 = arith.addi %665, %c3_i32_239 : i32
    %684 = arith.index_cast %683 : i32 to index
    %685 = memref.load %arg4[%684] : memref<32xf32, #tpu.memory_space<smem>>
    %686 = vector.broadcast %685 : f32 to vector<16x16xf32>
    %687 = arith.mulf %551, %686 : vector<16x16xf32>
    %688 = arith.addf %682, %687 : vector<16x16xf32>
    %c0_240 = arith.constant 0 : index
    %c4 = arith.constant 4 : index
    %c0_241 = arith.constant 0 : index
    %c0_242 = arith.constant 0 : index
    %689 = vector.load %arg8[%c0_240, %c4, %c0_241, %c0_242] : memref<1x8x16x16xf32, #tpu.memory_space<vmem>>, vector<1x1x16x16xf32>
    %690 = vector.shape_cast %689 : vector<1x1x16x16xf32> to vector<16x16xf32>
    %691 = vector.shape_cast %688 : vector<16x16xf32> to vector<1x1x16x16xf32>
    tpu.vector_store %arg8[%c0_240, %c4, %c0_241, %c0_242], %691 {strides = array<i32>} : memref<1x8x16x16xf32, #tpu.memory_space<vmem>>, vector<1x1x16x16xf32>,
    %c4_i32_243 = arith.constant 4 : i32
    %692 = arith.muli %arg2, %c4_i32_243 : i32
    %c20_i32 = arith.constant 20 : i32
    %693 = arith.addi %c20_i32, %692 : i32
    %c0_i32_244 = arith.constant 0 : i32
    %694 = arith.addi %693, %c0_i32_244 : i32
    %695 = arith.index_cast %694 : i32 to index
    %696 = memref.load %arg4[%695] : memref<32xf32, #tpu.memory_space<smem>>
    %697 = vector.broadcast %696 : f32 to vector<16x16xf32>
    %698 = arith.mulf %140, %697 : vector<16x16xf32>
    %c1_i32_245 = arith.constant 1 : i32
    %699 = arith.addi %693, %c1_i32_245 : i32
    %700 = arith.index_cast %699 : i32 to index
    %701 = memref.load %arg4[%700] : memref<32xf32, #tpu.memory_space<smem>>
    %702 = vector.broadcast %701 : f32 to vector<16x16xf32>
    %703 = arith.mulf %277, %702 : vector<16x16xf32>
    %704 = arith.addf %698, %703 : vector<16x16xf32>
    %c2_i32_246 = arith.constant 2 : i32
    %705 = arith.addi %693, %c2_i32_246 : i32
    %706 = arith.index_cast %705 : i32 to index
    %707 = memref.load %arg4[%706] : memref<32xf32, #tpu.memory_space<smem>>
    %708 = vector.broadcast %707 : f32 to vector<16x16xf32>
    %709 = arith.mulf %414, %708 : vector<16x16xf32>
    %710 = arith.addf %704, %709 : vector<16x16xf32>
    %c3_i32_247 = arith.constant 3 : i32
    %711 = arith.addi %693, %c3_i32_247 : i32
    %712 = arith.index_cast %711 : i32 to index
    %713 = memref.load %arg4[%712] : memref<32xf32, #tpu.memory_space<smem>>
    %714 = vector.broadcast %713 : f32 to vector<16x16xf32>
    %715 = arith.mulf %551, %714 : vector<16x16xf32>
    %716 = arith.addf %710, %715 : vector<16x16xf32>
    %c0_248 = arith.constant 0 : index
    %c5 = arith.constant 5 : index
    %c0_249 = arith.constant 0 : index
    %c0_250 = arith.constant 0 : index
    %717 = vector.load %arg8[%c0_248, %c5, %c0_249, %c0_250] : memref<1x8x16x16xf32, #tpu.memory_space<vmem>>, vector<1x1x16x16xf32>
    %718 = vector.shape_cast %717 : vector<1x1x16x16xf32> to vector<16x16xf32>
    %719 = vector.shape_cast %716 : vector<16x16xf32> to vector<1x1x16x16xf32>
    tpu.vector_store %arg8[%c0_248, %c5, %c0_249, %c0_250], %719 {strides = array<i32>} : memref<1x8x16x16xf32, #tpu.memory_space<vmem>>, vector<1x1x16x16xf32>,
    %c4_i32_251 = arith.constant 4 : i32
    %720 = arith.muli %arg2, %c4_i32_251 : i32
    %c24_i32 = arith.constant 24 : i32
    %721 = arith.addi %c24_i32, %720 : i32
    %c0_i32_252 = arith.constant 0 : i32
    %722 = arith.addi %721, %c0_i32_252 : i32
    %723 = arith.index_cast %722 : i32 to index
    %724 = memref.load %arg4[%723] : memref<32xf32, #tpu.memory_space<smem>>
    %725 = vector.broadcast %724 : f32 to vector<16x16xf32>
    %726 = arith.mulf %140, %725 : vector<16x16xf32>
    %c1_i32_253 = arith.constant 1 : i32
    %727 = arith.addi %721, %c1_i32_253 : i32
    %728 = arith.index_cast %727 : i32 to index
    %729 = memref.load %arg4[%728] : memref<32xf32, #tpu.memory_space<smem>>
    %730 = vector.broadcast %729 : f32 to vector<16x16xf32>
    %731 = arith.mulf %277, %730 : vector<16x16xf32>
    %732 = arith.addf %726, %731 : vector<16x16xf32>
    %c2_i32_254 = arith.constant 2 : i32
    %733 = arith.addi %721, %c2_i32_254 : i32
    %734 = arith.index_cast %733 : i32 to index
    %735 = memref.load %arg4[%734] : memref<32xf32, #tpu.memory_space<smem>>
    %736 = vector.broadcast %735 : f32 to vector<16x16xf32>
    %737 = arith.mulf %414, %736 : vector<16x16xf32>
    %738 = arith.addf %732, %737 : vector<16x16xf32>
    %c3_i32_255 = arith.constant 3 : i32
    %739 = arith.addi %721, %c3_i32_255 : i32
    %740 = arith.index_cast %739 : i32 to index
    %741 = memref.load %arg4[%740] : memref<32xf32, #tpu.memory_space<smem>>
    %742 = vector.broadcast %741 : f32 to vector<16x16xf32>
    %743 = arith.mulf %551, %742 : vector<16x16xf32>
    %744 = arith.addf %738, %743 : vector<16x16xf32>
    %c0_256 = arith.constant 0 : index
    %c6 = arith.constant 6 : index
    %c0_257 = arith.constant 0 : index
    %c0_258 = arith.constant 0 : index
    %745 = vector.load %arg8[%c0_256, %c6, %c0_257, %c0_258] : memref<1x8x16x16xf32, #tpu.memory_space<vmem>>, vector<1x1x16x16xf32>
    %746 = vector.shape_cast %745 : vector<1x1x16x16xf32> to vector<16x16xf32>
    %747 = vector.shape_cast %744 : vector<16x16xf32> to vector<1x1x16x16xf32>
    tpu.vector_store %arg8[%c0_256, %c6, %c0_257, %c0_258], %747 {strides = array<i32>} : memref<1x8x16x16xf32, #tpu.memory_space<vmem>>, vector<1x1x16x16xf32>,
    %c4_i32_259 = arith.constant 4 : i32
    %748 = arith.muli %arg2, %c4_i32_259 : i32
    %c28_i32 = arith.constant 28 : i32
    %749 = arith.addi %c28_i32, %748 : i32
    %c0_i32_260 = arith.constant 0 : i32
    %750 = arith.addi %749, %c0_i32_260 : i32
    %751 = arith.index_cast %750 : i32 to index
    %752 = memref.load %arg4[%751] : memref<32xf32, #tpu.memory_space<smem>>
    %753 = vector.broadcast %752 : f32 to vector<16x16xf32>
    %754 = arith.mulf %140, %753 : vector<16x16xf32>
    %c1_i32_261 = arith.constant 1 : i32
    %755 = arith.addi %749, %c1_i32_261 : i32
    %756 = arith.index_cast %755 : i32 to index
    %757 = memref.load %arg4[%756] : memref<32xf32, #tpu.memory_space<smem>>
    %758 = vector.broadcast %757 : f32 to vector<16x16xf32>
    %759 = arith.mulf %277, %758 : vector<16x16xf32>
    %760 = arith.addf %754, %759 : vector<16x16xf32>
    %c2_i32_262 = arith.constant 2 : i32
    %761 = arith.addi %749, %c2_i32_262 : i32
    %762 = arith.index_cast %761 : i32 to index
    %763 = memref.load %arg4[%762] : memref<32xf32, #tpu.memory_space<smem>>
    %764 = vector.broadcast %763 : f32 to vector<16x16xf32>
    %765 = arith.mulf %414, %764 : vector<16x16xf32>
    %766 = arith.addf %760, %765 : vector<16x16xf32>
    %c3_i32_263 = arith.constant 3 : i32
    %767 = arith.addi %749, %c3_i32_263 : i32
    %768 = arith.index_cast %767 : i32 to index
    %769 = memref.load %arg4[%768] : memref<32xf32, #tpu.memory_space<smem>>
    %770 = vector.broadcast %769 : f32 to vector<16x16xf32>
    %771 = arith.mulf %551, %770 : vector<16x16xf32>
    %772 = arith.addf %766, %771 : vector<16x16xf32>
    %c0_264 = arith.constant 0 : index
    %c7_265 = arith.constant 7 : index
    %c0_266 = arith.constant 0 : index
    %c0_267 = arith.constant 0 : index
    %773 = vector.load %arg8[%c0_264, %c7_265, %c0_266, %c0_267] : memref<1x8x16x16xf32, #tpu.memory_space<vmem>>, vector<1x1x16x16xf32>
    %774 = vector.shape_cast %773 : vector<1x1x16x16xf32> to vector<16x16xf32>
    %775 = vector.shape_cast %772 : vector<16x16xf32> to vector<1x1x16x16xf32>
    tpu.vector_store %arg8[%c0_264, %c7_265, %c0_266, %c0_267], %775 {strides = array<i32>} : memref<1x8x16x16xf32, #tpu.memory_space<vmem>>, vector<1x1x16x16xf32>,
    return
  }
  func.func @transform_0(%arg0: i32, %arg1: i32, %arg2: i32) -> i32 {
    %c0_i32 = arith.constant 0 : i32
    %c0_i32_0 = arith.constant 0 : i32
    return %c0_i32 : i32
  }
  func.func @transform_1(%arg0: i32, %arg1: i32, %arg2: i32) -> i32 {
    %c0_i32 = arith.constant 0 : i32
    %c0_i32_0 = arith.constant 0 : i32
    return %c0_i32 : i32
  }
  func.func @transform_2(%arg0: i32, %arg1: i32, %arg2: i32) -> (i32, i32, i32, i32) {
    %c2_i32 = arith.constant 2 : i32
    %0 = arith.muli %arg1, %c2_i32 : i32
    %c1_i32 = arith.constant 1 : i32
    %1 = arith.subi %0, %c1_i32 : i32
    %c0_i32 = arith.constant 0 : i32
    %2 = arith.maxsi %1, %c0_i32 : i32
    %c0_i32_0 = arith.constant 0 : i32
    %c0_i32_1 = arith.constant 0 : i32
    return %arg0, %arg2, %2, %c0_i32_0 : i32, i32, i32, i32
  }
  func.func @transform_3(%arg0: i32, %arg1: i32, %arg2: i32) -> (i32, i32, i32, i32) {
    %c0_i32 = arith.constant 0 : i32
    %c0_i32_0 = arith.constant 0 : i32
    return %arg0, %arg2, %arg1, %c0_i32 : i32, i32, i32, i32
  }
  func.func @transform_4(%arg0: i32, %arg1: i32, %arg2: i32) -> (i32, i32, i32, i32) {
    %c1_i32 = arith.constant 1 : i32
    %0 = arith.addi %arg1, %c1_i32 : i32
    %c2_i32 = arith.constant 2 : i32
    %1 = arith.muli %0, %c2_i32 : i32
    %c1_i32_0 = arith.constant 1 : i32
    %2 = arith.minsi %1, %c1_i32_0 : i32
    %c0_i32 = arith.constant 0 : i32
    %c0_i32_1 = arith.constant 0 : i32
    return %arg0, %arg2, %2, %c0_i32 : i32, i32, i32, i32
  }
  func.func @transform_5(%arg0: i32, %arg1: i32, %arg2: i32) -> (i32, i32, i32, i32) {
    %c0_i32 = arith.constant 0 : i32
    %c0_i32_0 = arith.constant 0 : i32
    %c0_i32_1 = arith.constant 0 : i32
    return %arg0, %c0_i32, %arg1, %c0_i32_0 : i32, i32, i32, i32
  }
}

</mosaic_0001>

<bundles_post_ra>
// kernel: tpu_custom_call.1
= control target key start
LH: loop header
LB: loop body
LE: loop exit
PB: predicated region body
PF: predicated region fallthrough
CT: control target
= control target key end

     0   :  { %s2953_s0 = inlined_call_operand.hbm [shape: f32[36], index: 0, kind: input, shape index: {}]   ;;  %s2954_s1 = inlined_call_operand.hbm [shape: f32[32], index: 1, kind: input, shape index: {}]   ;;  %s2955_s2 = inlined_call_operand.hbm [shape: f32[2,4,16,16], index: 2, kind: input, shape index: {}]   ;;  %s2956_s3 = inlined_call_operand.hbm [shape: f32[2,4,16,16], index: 3, kind: input, shape index: {}]   ;;  %s2957_s4 = inlined_call_operand.hbm [shape: f32[2,4,16,16], index: 4, kind: input, shape index: {}]   ;;  %s2958_s5 = inlined_call_operand.hbm [shape: f32[2,8,16,16], index: 5, kind: output, shape index: {}]  }
   0x1   :  { %2972 = sst [smem:[#allocation26_spill]] %s2953_s0 }
   0x2   :  { %2973 = sst [smem:[#allocation27_spill]] %s2954_s1 }
   0x3   :  { %2974 = sst [smem:[#allocation28_spill]] %s2955_s2 }
   0x4   :  { %2975 = sst [smem:[#allocation29_spill]] %s2956_s3 }
   0x5   :  { %2976 = sst [smem:[#allocation30_spill]] %s2957_s4 }
   0x6   :  { %10 = vsyncpa [#allocation5], 0 }
   0x7   :  { %11 = vsyncpa [#allocation7], 0 }
   0x8   :  { %12 = vsyncpa [#allocation3], 0 }
   0x9   :  { %14 = vsyncpa [#allocation3 + $0x1], 0 }
   0xa   :  { %15 = vsyncpa [#allocation10], 0 }
   0xb   :  { %17 = vsyncpa [#allocation10 + $0x1], 0 }
   0xc   :  { %18 = vsyncpa [#allocation4], 0 }
   0xd   :  { %20 = vsyncpa [#allocation4 + $0x1], 0  ;;  %s1875_s18 = smov 0   ;;  %s1877_s19 = smov 0  }
   0xe   :  { %s1879_s20 = smov 0   ;;  %s1881_s21 = smov 0  }
   0xf   :  { %s1883_s22 = smov 0   ;;  %s1885_s23 = smov 0  }
  0x10 LB: > { %2977 = sst [smem:[#allocation18_spill]] %s1818_s19  ;;  %s45_s24 = sadd.s32 1, %s1830_s22  ;;  %s1834_s23 = sphi %s1885_s23, %s26_s23   ;;  %s1830_s22 = sphi %s1883_s22, %s3026_s22   ;;  %s1826_s21 = sphi %s1881_s21, %s3025_s21   ;;  %s1822_s20 = sphi %s1879_s20, %s3024_s20   ;;  %s1818_s19 = sphi %s1877_s19, %s3023_s19   ;;  %s1814_s18 = sphi %s1875_s18, %s3022_s18  }
  0x11   : > { %2978 = sst [smem:[#allocation19_spill]] %s1822_s20  ;;  %s106_s25 = sadd.s32 1, %s1822_s20 }
  0x12   : > { %2979 = sst [smem:[#allocation20_spill]] %s1830_s22  ;;  %p47_p0 = scmp.ge.s32.totalorder %s45_s24, 2 }
  0x13   : > { %2980 = sst [smem:[#allocation21_spill]] %s1834_s23  ;;  %p113_p1 = scmp.ne.s32.totalorder %s1822_s20, %s1818_s19 }
  0x14   : > { %p114_p2 = scmp.eq.s32.totalorder %s1834_s23, 0  ;;  %p1400_p3 = scmp.ge.s32.totalorder %s1834_s23, 2 }
  0x15   : > { %s3028_s24 = smov (%p47_p0, %s45_s24), 0  ;;  %p1559_p5 = scmp.lt.s32.totalorder %s1834_s23, 2 }
  0x16   : > { %2981 = sst [smem:[#allocation22_spill]] %s3028_s24  ;;  %p115_p4 = por %p114_p2, %p113_p1 }
  0x17   : > { %s99_s26 = ssub.s32 %s1830_s22, %s3028_s24  ;;  %s1920_s27 = sand.u32 1, %s1822_s20  }
  0x18   : > { %p104_p6 = scmp.eq.s32.totalorder %s99_s26, 0  ;;  %s1923_s28 = sshll.u32 %s1830_s22, 6 }
  0x19   : > { %p1925_p7 = pnand %p1559_p5, %p115_p4  ;;  %s289_s6 = sand.u32 1, %s1834_s23  }
  0x1a   : > { %s1930_s30 = scalar_select %p104_p6, %s1822_s20, %s106_s25  }
  0x1b   : > { %s1404_s7 = sshll.u32 %s1920_s27, 6  ;;  %s2984_s3 = sld [smem:[#allocation29_spill]] }
  0x1c   : > { %2983 = sst [smem:[#allocation23_spill]] %s1930_s30  ;;  %s293_s11 = scalar_lea.vmem [#allocation9], %s1404_s7 }
  0x1d   : > { %s306_s12 = sshll.u32 %s293_s11, 4  ;;  %s1517_s14 = sadd.s32 8, %s1923_s28  ;;  %s307_s12 = int_to_ptr.vmem [resolvable:$true] %s306_s12 }
  0x1e   : > { %s1939_s15 = scalar_lea.sflag [#allocation10], %s289_s6  ;;  %s2959_s16 = smov 128  }
  0x1f   : > { %s2961_s17 = smov 8   ;;  %s2985_s4 = sld [smem:[#allocation30_spill]] }
  0x20   : > { %s1954_s9 = sadd.s32 4294967295, %s1834_s23   ;;  %s1396_s6 = sadd.s32 4294967294, %s1834_s23  }
  0x21   : > { %s303_s10 = scalar_lea.hbm %s2984_s3, %s1923_s28  ;;  %p119_p8 = scmp.ne.s32.totalorder %s1818_s19, %s1814_s18 }
  0x22   : > { %s304_s13 = sshll.u32 %s303_s10, 4  ;;  %p120_p9 = scmp.eq.s32.totalorder %s1954_s9, 0  ;;  %s305_s13 = int_to_ptr.hbm [resolvable:$true] %s304_s13 }
  0x23   : > { %1549 = dma.hbm_to_vmem [thread:$0]  (!%p1925_p7), %s305_s13, 1024, %s307_s12, %s1939_s15, %s2959_s16, %s2959_s16, %s2961_s17  }
  0x24   : > { %p213_p10 = scmp.eq.s32.totalorder %s1954_s9, 1  ;;  %p219_p11 = scmp.eq.s32.totalorder %s1396_s6, 1 }
  0x25   : > { %s1950_s7 = scalar_lea.hbm %s2985_s4, %s1517_s14  ;;  %p1397_p12 = scmp.ge.s32.totalorder %s1834_s23, 1 }
  0x26   : > { %p1964_p13 = por %p120_p9, %p119_p8  ;;  %p1971_p0 = por %p213_p10, %p113_p1 }
  0x27   : > { %p1975_p2 = por %p219_p11, %p119_p8  ;;  %p226_p4 = scmp.lt.s32.totalorder %s1834_s23, 3 }
  0x28   : > { %s2989_s0 = sld [smem:[#allocation26_spill]]  ;;  %s1401_s13 = sshll.u32 %s1920_s27, 5 }
  0x29   : > { %p1983_p5 = pnand %p1397_p12, %p226_p4  ;;  %s2991_s1 = sld [smem:[#allocation27_spill]] }
  0x2a   : > { %s2992_s2 = sld [smem:[#allocation28_spill]]  ;;  %s1838_s4 = smov [#allocation2]  }
  0x2b   : > { %p1536_p1 = pneg %p1983_p5  ;;  %s1839_s8 = smov [#allocation6]  }
  0x2c   : > { %s263_s6 = scalar_lea.vmem [#allocation8], %s1401_s13  ;;  %s260_s24 = scalar_lea.sflag [#allocation3], %s1920_s27 }
  0x2d   : > { %p1537_p6 = pnand %p1536_p1, %p120_p9  ;;  %s1840_s22 = smov 256  }
  0x2e   : > { %s238_s25 = sshll.u32 %s2989_s0, 4  ;;  %s2993_s30 = smov 8   ;;  %s239_s25 = int_to_ptr.hbm [resolvable:$true] %s238_s25 }
  0x2f   : > { %s248_s16 = sshll.u32 %s2991_s1, 4  ;;  %s279_s1 = sshll.u32 %s263_s6, 4  ;;  %s249_s16 = int_to_ptr.hbm [resolvable:$true] %s248_s16  ;;  %s280_s1 = int_to_ptr.vmem [resolvable:$true] %s279_s1 }
  0x30   : > { %s276_s0 = scalar_lea.hbm %s2992_s2, %s1923_s28  ;;  %s2994_s20 = smov 128  }
  0x31   : > { %s277_s3 = sshll.u32 %s276_s0, 4  ;;  %s2995_s23 = sshll.u32 %s1950_s7, 4  ;;  %s278_s3 = int_to_ptr.hbm [resolvable:$true] %s277_s3  ;;  %s335_s23 = int_to_ptr.hbm [resolvable:$true] %s2995_s23 }
  0x32   : > { %1539 = dma.hbm_to_smem (!%p1537_p6), %s239_s25, 16, %s1838_s4, [#allocation5]  }
  0x33   : > { %1542 = dma.hbm_to_smem (!%p1537_p6), %s249_s16, 16, %s1839_s8, [#allocation7]  }
  0x34   : > { %1546 = dma.hbm_to_vmem [thread:$0]  (!%p1925_p7), %s278_s3, 512, %s280_s1, %s260_s24, %s1840_s22, %s2994_s20, %s2993_s30  }
  0x35   : > { %s320_s28 = scalar_lea.vmem [#allocation11], %s1401_s13  ;;  %348 = sbr.rel (%p1983_p5) target bundleno = 303 (0x12f), region = 40 }
  0x36   : > { %s336_s0 = sshll.u32 %s320_s28, 4  ;;  %s337_s0 = int_to_ptr.vmem [resolvable:$true] %s336_s0 }
  0x37   : > { %1552 = dma.hbm_to_vmem [thread:$0]  (!%p1925_p7), %s335_s23, 512, %s337_s0, %s1939_s15, %s1840_s22, %s2994_s20, %s2993_s30  }
  0x3a   : > { %1793 = dma.done.wait (%p120_p9), [#allocation5], 16  }
  0x3b   : > { %1795 = vsyncadd (%p120_p9), [#allocation5], 4294967280 }
  0x3c   : > { %1797 = dma.done.wait (%p120_p9), [#allocation7], 16  }
  0x3d   : > { %1799 = vsyncadd (%p120_p9), [#allocation7], 4294967280  ;;  %s2022_s1 = sand.u32 1, %s1818_s19  }
  0x3e   : > { %s1413_s3 = sshll.u32 %s2022_s1, 5  ;;  %s361_s4 = scalar_lea.sflag [#allocation3], %s2022_s1 }
  0x3f   : > { %s2026_s20 = scalar_lea.vmem [#allocation8], %s1413_s3 }
  0x40   : > { %1801 = dma.done.wait (%p1964_p13), %s361_s4, 512  }
  0x41   : > { %1803 = vsyncadd (%p1964_p13), %s361_s4, 4294966784  ;;  %s370_s22 = sand.u32 1, %s1954_s9   ;;  %s1414_s23 = sshll.u32 %s2022_s1, 6 }
  0x42   : > { %s371_s24 = scalar_lea.sflag [#allocation10], %s370_s22  ;;  %s2034_s27 = scalar_lea.vmem [#allocation9], %s1414_s23 }
  0x43   : > { %1805 = dma.done.wait (%p1964_p13), %s371_s24, 1536  }
  0x44   : > { %1807 = vsyncadd (%p1964_p13), %s371_s24, 4294965760  ;;  %s2040_s29 = scalar_lea.vmem [#allocation11], %s1413_s3 }
  0x45   : > { %390 = sfence }
  0x46   : > { %v2043_v0 = vld [vmem:[%s2034_s27] sm:$0xff]  ;;  %s1841_s30 = smov 1   ;;  %s1842_s15 = smov 127   ;;  %v2052_v3 = vld [vmem:[%s2034_s27 + $0x8] sm:$0xff]  ;;  %v2067_v6 = vld [vmem:[%s2034_s27 + $0x10] sm:$0xff]  ;;  %vm449_vm0 = vcmask 121856  }
  0x47   : > { %452 = vrot.lane.b32.xlu1 %v2043_v0, %s1841_s30  ;;  %443 = vrot.lane.b32.xlu0 %v2043_v0, %s1842_s15  ;;  %v517_v1 = vld [vmem:[%s2026_s20 + $0x7] sm:$0x1]  ;;  %v520_v4 = vld [vmem:[%s2040_s29] sm:$0x1]  ;;  %s1417_s16 = sld [smem:[#allocation2 + $0x1]]  ;;  %vm458_vm1 = vcmask 7168  }
  0x48   : > { %v519_v2 = vmul.f32 0.0, %v517_v1  ;;  %v2060_v5 = vmul.f32 0.0, %v520_v4  ;;  %v2072_v7 = vld [vmem:[%s2034_s27 + $0x18] sm:$0xff]  ;;  %v1437_v8 = vld [vmem:[%s2040_s29 + $0x8] sm:$0x1]  ;;  %v2091_v12 = vld [vmem:[%s2034_s27 + $0x20] sm:$0xff] }
  0x49   : > { %v1436_v9 = vld [vmem:[%s2026_s20 + $0xf] sm:$0x1]  ;;  %v2082_v10 = vmul.f32 0.0, %v1437_v8  ;;  %v1449_v14 = vld [vmem:[%s2026_s20 + $0x17] sm:$0x1]  ;;  %v2124_v19 = vld [vmem:[%s2034_s27 + $0x38] sm:$0xff] }
  0x4a   : > { %523 = vrot.lane.b32.xlu2 %v519_v2, %s1842_s15  ;;  %v2084_v11 = vmul.f32 0.0, %v1436_v9  ;;  %v2096_v13 = vld [vmem:[%s2034_s27 + $0x28] sm:$0xff]  ;;  %v1450_v15 = vld [vmem:[%s2040_s29 + $0x10] sm:$0x1]  ;;  %v2110_v16 = vmul.f32 0.0, %v1449_v14  ;;  %s1418_s17 = sld [smem:[#allocation2 + $0x2]] }
  0x4b   : > { %v2114_v17 = vmul.f32 0.0, %v1450_v15  ;;  %v2117_v18 = vld [vmem:[%s2034_s27 + $0x30] sm:$0xff]  ;;  %v1462_v20 = vld [vmem:[%s2026_s20 + $0x1f] sm:$0x1]  ;;  %v1463_v22 = vld [vmem:[%s2040_s29 + $0x18] sm:$0x1] }
  0x4c   : > { %v2135_v21 = vmul.f32 0.0, %v1462_v20  ;;  %v2142_v23 = vmul.f32 0.0, %v1463_v22  ;;  %s461_s7 = sld [smem:[#allocation2]]  ;;  %vm552_vm2 = vcmask 1040384   ;;  %vm561_vm3 = vcmask 1046528  }
  0x4d   : > { %v467_v26 = vstv %s1417_s16  ;;  %s2153_s9 = sld [smem:[#allocation2 + $0x4]]  ;;  %vm1006_vm4 = vcmask 130048  }
  0x4e   : > { %v532_v27 = vmul.f32 %v519_v2, %v467_v26  ;;  %s1423_s10 = sld [smem:[#allocation2 + $0x7]]  ;;  %v468_v42 = vmul.f32 %v467_v26, %v2043_v0 }
  0x4f   : > { %454 = vrot.lane.b32.xlu1 %v2052_v3, %s1841_s30  ;;  %445 = vrot.lane.b32.xlu0 %v2052_v3, %s1842_s15  ;;  %s2157_s25 = sld [smem:[#allocation2 + $0x3]] }
  0x50   : > { %v2151_v29 = vstv %s1418_s17  ;;  %s1422_s26 = sld [smem:[#allocation2 + $0x6]] }
  0x51   : > { %s2159_s13 = sld [smem:[#allocation2 + $0x5]] }
  0x52   : > { %527 = vrot.lane.b32.xlu2 %v519_v2, %s1841_s30  ;;  %v462_v30 = vstv %s461_s7  ;;  %s1424_s14 = sld [smem:[#allocation2 + $0x8]] }
  0x53   : > { %v486_v36 = vstv %s2153_s9  ;;  %s2166_s8 = sld [smem:[#allocation2 + $0xb]] }
  0x54   : > { %v2162_v37 = vstv %s1423_s10  ;;  %s2171_s6 = sld [smem:[#allocation2 + $0xe]]  ;;  %v487_v43 = vmul.f32 %v486_v36, %v2043_v0  ;;  %v488_v8 = vmul.f32 %v486_v36, %v2052_v3 }
  0x55   : > { %v481_v39 = vstv %s2157_s25  ;;  %v506_v44 = vmul.f32 %v2162_v37, %v2043_v0  ;;  %s2178_s28 = sld [smem:[#allocation2 + $0x11]]  ;;  %v469_v0 = vmul.f32 %v467_v26, %v2052_v3  ;;  %v507_v1 = vmul.f32 %v2162_v37, %v2052_v3 }
  0x56   : > { %v2169_v40 = vstv %s1422_s26  ;;  %s2184_s0 = sld [smem:[#allocation6]] }
  0x57   : > { %541 = vrot.lane.b32.xlu1 %v2060_v5, %s1841_s30  ;;  %537 = vrot.lane.b32.xlu0 %v2060_v5, %s1842_s15  ;;  %v493_v45 = vstv %s2159_s13  ;;  %s2187_s3 = sld [smem:[#allocation6 + $0x4]] }
  0x58   : > { %v2181_v48 = vstv %s1424_s14  ;;  %s2190_s4 = sld [smem:[#allocation6 + $0x8]] }
  0x59   : > { %s2193_s20 = sld [smem:[#allocation6 + $0xc]] }
  0x5a   : > { %583 = vrot.lane.b32.xlu2 %v2067_v6, %s1842_s15  ;;  %s2195_s22 = sld [smem:[#allocation6 + $0x10]] }
  0x5b   : > { %s2197_s23 = sld [smem:[#allocation6 + $0x14]] }
  0x5c   : > { %s2199_s24 = sld [smem:[#allocation6 + $0x18]] }
  0x5d   : > { %s2206_s27 = sld [smem:[#allocation6 + $0x1c]] }
  0x5e   : > { %s2211_s29 = sld [smem:[#allocation2 + $0x9]] }
  0x5f   : > { %591 = vrot.lane.b32.xlu1 %v2067_v6, %s1841_s30  ;;  %585 = vrot.lane.b32.xlu0 %v2072_v7, %s1842_s15  ;;  %s2221_s16 = sld [smem:[#allocation2 + $0xd]] }
  0x60   : > { %s2223_s17 = sld [smem:[#allocation2 + $0x10]] }
  0x61   : > { %s2227_s7 = sld [smem:[#allocation2 + $0xf]] }
  0x62   : > { %593 = vrot.lane.b32.xlu2 %v2072_v7, %s1841_s30  ;;  %s2233_s9 = sld [smem:[#allocation2 + $0x12]] }
  0x63   : > { %s2238_s10 = sld [smem:[#allocation2 + $0x13]] }
  0x64   : > { %s2245_s25 = sld [smem:[#allocation2 + $0x15]] }
  0x65   : > { %s2251_s26 = sld [smem:[#allocation2 + $0x16]] }
  0x66   : > { %s2257_s13 = sld [smem:[#allocation2 + $0x18]] }
  0x67   : > { %680 = vrot.lane.b32.xlu1 %v2082_v10, %s1841_s30  ;;  %666 = vrot.lane.b32.xlu0 %v2084_v11, %s1841_s30  ;;  %s2262_s14 = sld [smem:[#allocation2 + $0x19]] }
  0x68   : > { %s2422_s2 = sld [smem:[#allocation2 + $0x1c]] }
  0x69   : > { %s2430_s19 = sld [smem:[#allocation2 + $0x1e]] }
  0x6a   : > { %727 = vrot.lane.b32.xlu2 %v2091_v12, %s1841_s30 }
  0x6f   : > { %662 = vrot.lane.b32.xlu1 %v2084_v11, %s1842_s15  ;;  %729 = vrot.lane.b32.xlu0 %v2096_v13, %s1841_s30 }
  0x72   : > { %676 = vrot.lane.b32.xlu2 %v2082_v10, %s1842_s15 }
  0x77   : > { %721 = vrot.lane.b32.xlu1 %v2096_v13, %s1842_s15  ;;  %719 = vrot.lane.b32.xlu0 %v2091_v12, %s1842_s15 }
  0x7a   : > { %802 = vrot.lane.b32.xlu2 %v2110_v16, %s1841_s30 }
  0x7f   : > { %863 = vrot.lane.b32.xlu1 %v2117_v18, %s1841_s30  ;;  %816 = vrot.lane.b32.xlu0 %v2114_v17, %s1841_s30 }
  0x82   : > { %865 = vrot.lane.b32.xlu2 %v2124_v19, %s1841_s30 }
  0x87   : > { %812 = vrot.lane.b32.xlu1 %v2114_v17, %s1842_s15  ;;  %798 = vrot.lane.b32.xlu0 %v2110_v16, %s1842_s15 }
  0x8a   : > { %855 = vrot.lane.b32.xlu2 %v2117_v18, %s1842_s15 }
  0x8f   : > { %938 = vrot.lane.b32.xlu1 %v2135_v21, %s1841_s30  ;;  %857 = vrot.lane.b32.xlu0 %v2124_v19, %s1842_s15 }
  0x92   : > { %952 = vrot.lane.b32.xlu2 %v2142_v23, %s1841_s30  ;;  %s2215_s30 = sld [smem:[#allocation2 + $0xa]] }
  0x97   : > { %948 = vrot.lane.b32.xlu1 %v2142_v23, %s1842_s15  ;;  %934 = vrot.lane.b32.xlu0 %v2135_v21, %s1842_s15  ;;  %s2217_s15 = sld [smem:[#allocation2 + $0xc]] }
  0xa4   : > { %v524_v24 = vpop.permute.xlu2 %523 }
  0xa5   : > { %v526_v25 = vsel %vm449_vm0, %v524_v24, 0.0 }
  0xa6   : > { %v534_v32 = vmul.f32 %v526_v25, %v2151_v29 }
  0xac   : > { %v528_v28 = vpop.permute.xlu2 %527 }
  0xad   : > { %v530_v31 = vsel %vm458_vm1, 0.0, %v528_v28 }
  0xae   : > { %v531_v33 = vmul.f32 %v530_v31, %v462_v30 }
  0xb0   : > { %v533_v34 = vadd.f32 %v532_v27, %v531_v33 }
  0xb2   : > { %v535_v35 = vadd.f32 %v534_v32, %v533_v34  ;;  %v2230_v34 = vstv %s2166_s8  ;;  %s2274_s8 = sld [smem:[#allocation6 + $0x1]] }
  0xb4   : > { %v2164_v38 = vpop.permute.xlu2 %583 }
  0xb9   : > { %v453_v41 = vpop.permute.xlu1 %452  ;;  %v444_v46 = vpop.permute.xlu0 %443 }
  0xba   : > { %v459_v47 = vsel %vm458_vm1, 0.0, %v453_v41  ;;  %v450_v49 = vsel %vm449_vm0, %v444_v46, 0.0  ;;  %v546_v41 = vmul.f32 %v2060_v5, %v2162_v37 }
  0xbb   : > { %v463_v50 = vmul.f32 %v462_v30, %v459_v47  ;;  %v482_v51 = vmul.f32 %v481_v39, %v459_v47  ;;  %v501_v52 = vmul.f32 %v2169_v40, %v459_v47  ;;  %v475_v53 = vmul.f32 %v2151_v29, %v450_v49 }
  0xbc   : > { %v494_v54 = vmul.f32 %v493_v45, %v450_v49  ;;  %v513_v58 = vmul.f32 %v2181_v48, %v450_v49  ;;  %v2201_v62 = vpop.permute.xlu2 %593 }
  0xbd   : > { %v470_v55 = vadd.f32 %v468_v42, %v463_v50  ;;  %v489_v56 = vadd.f32 %v487_v43, %v482_v51  ;;  %v508_v57 = vadd.f32 %v506_v44, %v501_v52  ;;  %v985_v51 = vstv %s2184_s0  ;;  %s2581_s0 = sld [smem:[#allocation2 + $0x20]] }
  0xbf   : > { %v477_v59 = vadd.f32 %v475_v53, %v470_v55  ;;  %v496_v60 = vadd.f32 %v494_v54, %v489_v56  ;;  %v515_v61 = vadd.f32 %v513_v58, %v508_v57  ;;  %v1011_v54 = vstv %s2187_s3  ;;  %s2595_s3 = sld [smem:[#allocation2 + $0x23]] }
  0xc0   : > { %v1040_v55 = vstv %s2190_s4  ;;  %v1069_v57 = vstv %s2193_s20  ;;  %v605_v58 = vstv %s2215_s30  ;;  %s2297_s30 = sld [smem:[#allocation6 + $0xd]] }
  0xc1   : > { %v553_v63 = vrot.slane %v477_v59, 7  ;;  %v455_v2 = vpop.permute.xlu1 %454  ;;  %v446_v4 = vpop.permute.xlu0 %445  ;;  %v1098_v59 = vstv %s2195_s22  ;;  %s2641_s4 = sld [smem:[#allocation6 + $0x2]] }
  0xc2   : > { %v460_v9 = vsel %vm458_vm1, 0.0, %v455_v2  ;;  %v451_v14 = vsel %vm449_vm0, %v446_v4, 0.0  ;;  %v619_v2 = vstv %s2217_s15  ;;  %v598_v4 = vsel %vm458_vm1, 0.0, %v2201_v62  ;;  %s2448_s15 = sld [smem:[#allocation2 + $0x1f]] }
  0xc3   : > { %v558_v15 = vsel %vm552_vm2, %v535_v35, %v553_v63  ;;  %v464_v20 = vmul.f32 %v462_v30, %v460_v9  ;;  %v483_v22 = vmul.f32 %v481_v39, %v460_v9  ;;  %v502_v24 = vmul.f32 %v2169_v40, %v460_v9  ;;  %s2648_s20 = sld [smem:[#allocation6 + $0x6]] }
  0xc4   : > { %v571_v25 = vadd.f32 %v558_v15, %v496_v60  ;;  %v476_v27 = vmul.f32 %v2151_v29, %v451_v14  ;;  %v514_v28 = vmul.f32 %v2181_v48, %v451_v14  ;;  %v495_v33 = vmul.f32 %v493_v45, %v451_v14  ;;  %v728_v49 = vpop.permute.xlu2 %727  ;;  %s2657_s22 = sld [smem:[#allocation6 + $0xa]] }
  0xc5   : > { %v471_v3 = vadd.f32 %v469_v0, %v464_v20  ;;  %v509_v26 = vadd.f32 %v507_v1, %v502_v24  ;;  %v490_v31 = vadd.f32 %v488_v8, %v483_v22  ;;  %v631_v35 = vstv %s2171_s6  ;;  %s2495_s6 = sld [smem:[#allocation2 + $0x1a]] }
  0xc6   : > { %v562_v29 = vrot.slane %v515_v61, 1  ;;  %v2241_v45 = vstv %s2178_s28  ;;  %v1127_v60 = vstv %s2197_s23  ;;  %v624_v61 = vstv %s2221_s16  ;;  %s2282_s28 = sld [smem:[#allocation6 + $0x5]] }
  0xc7   : > { %v478_v30 = vadd.f32 %v476_v27, %v471_v3  ;;  %v2225_v32 = vadd.f32 %v514_v28, %v509_v26  ;;  %v497_v44 = vadd.f32 %v495_v33, %v490_v31  ;;  %v2269_v1 = vstv %s2211_s29  ;;  %s2288_s29 = sld [smem:[#allocation6 + $0x9]] }
  0xc8   : > { %v1156_v8 = vstv %s2199_s24  ;;  %v1185_v9 = vstv %s2206_s27  ;;  %v2280_v14 = vstv %s2227_s7  ;;  %v589_v15 = vsel %vm449_vm0, %v2164_v38, 0.0  ;;  %s2307_s16 = sld [smem:[#allocation6 + $0x11]] }
  0xc9   : > { %v554_v36 = vrot.slane %v478_v30, 7  ;;  %v563_v39 = vrot.slane %v2225_v32, 1  ;;  %v542_v42 = vpop.permute.xlu1 %541  ;;  %v538_v43 = vpop.permute.xlu0 %537  ;;  %v626_v22 = vmul.f32 %v2072_v7, %v624_v61  ;;  %v602_v3 = vmul.f32 %v2269_v1, %v598_v4  ;;  %s2324_s7 = sld [smem:[#allocation6 + $0x19]] }
  0xca   : > { %v544_v46 = vsel %vm458_vm1, 0.0, %v542_v42  ;;  %v540_v47 = vsel %vm449_vm0, %v538_v43, 0.0  ;;  %v621_v26 = vmul.f32 %v619_v2, %v598_v4  ;;  %v606_v27 = vmul.f32 %v2067_v6, %v605_v58  ;;  %s2667_s23 = sld [smem:[#allocation6 + $0xe]] }
  0xcb   : > { %v555_v5 = vsel %vm552_vm2, %v553_v63, %v554_v36  ;;  %v564_v37 = vsel %vm561_vm3, %v562_v29, %v563_v39  ;;  %v545_v50 = vmul.f32 %v544_v46, %v2169_v40  ;;  %v548_v40 = vmul.f32 %v540_v47, %v2181_v48  ;;  %s2672_s24 = sld [smem:[#allocation6 + $0x12]] }
  0xcc   : > { %v572_v52 = vadd.f32 %v555_v5, %v497_v44  ;;  %v2253_v53 = vadd.f32 %v571_v25, %v564_v37  ;;  %v643_v63 = vstv %s2223_s17  ;;  %v607_v48 = vmul.f32 %v2072_v7, %v605_v58  ;;  %s2314_s17 = sld [smem:[#allocation6 + $0x15]] }
  0xcd   : > { %v547_v56 = vadd.f32 %v546_v41, %v545_v50  ;;  %v645_v62 = vmul.f32 %v2072_v7, %v643_v63  ;;  %v2295_v38 = vmul.f32 %v2067_v6, %v624_v61  ;;  %v2301_v28 = vstv %s2233_s9  ;;  %s2334_s9 = sld [smem:[#allocation6 + $0x1d]] }
  0xce   : > { %v2304_v31 = vstv %s2238_s10  ;;  %v733_v30 = vsel %vm458_vm1, 0.0, %v728_v49  ;;  %v2970_v29 = vstv %s2245_s25  ;;  %v760_v36 = vstv %s2251_s26  ;;  %s2362_s10 = sld [smem:[#allocation2 + $0x14]] }
  0xcf   : > { %v549_v0 = vadd.f32 %v548_v40, %v547_v56  ;;  %v640_v41 = vmul.f32 %v2280_v14, %v598_v4  ;;  %v644_v42 = vmul.f32 %v2067_v6, %v643_v63  ;;  %v2319_v43 = vstv %s2257_s13  ;;  %s2368_s13 = sld [smem:[#allocation2 + $0x17]] }
  0xd0   : > { %v2322_v44 = vstv %s2262_s14  ;;  %v613_v46 = vmul.f32 %v2230_v34, %v589_v15  ;;  %v2329_v47 = vmul.f32 %v631_v35, %v589_v15  ;;  %v742_v49 = vmul.f32 %v2091_v12, %v2304_v31  ;;  %s2403_s14 = sld [smem:[#allocation2 + $0x1b]] }
  0xd1   : > { %v568_v20 = vrot.slane %v549_v0, 1  ;;  %v592_v24 = vpop.permute.xlu1 %591  ;;  %v586_v25 = vpop.permute.xlu0 %585  ;;  %v737_v5 = vmul.f32 %v2301_v28, %v733_v30  ;;  %v2337_v6 = vmul.f32 %v2241_v45, %v589_v15  ;;  %v761_v50 = vmul.f32 %v2091_v12, %v760_v36  ;;  %s2454_s26 = sld [smem:[#allocation2 + $0x21]] }
  0xd2   : > { %v597_v33 = vsel %vm458_vm1, 0.0, %v592_v24  ;;  %v609_v56 = vadd.f32 %v607_v48, %v602_v3  ;;  %v2345_v40 = vadd.f32 %v626_v22, %v621_v26  ;;  %v780_v61 = vmul.f32 %v2091_v12, %v2322_v44  ;;  %s2684_s27 = sld [smem:[#allocation6 + $0x16]] }
  0xd3   : > { %v570_v7 = vsel %vm561_vm3, %v563_v39, %v568_v20  ;;  %v677_v39 = vpop.permute.xlu2 %676  ;;  %v601_v37 = vmul.f32 %v2269_v1, %v597_v33  ;;  %v775_v0 = vmul.f32 %v2319_v43, %v733_v30  ;;  %v2350_v4 = vadd.f32 %v645_v62, %v640_v41 }
  0xd4   : > { %v2309_v32 = vadd.f32 %v572_v52, %v570_v7  ;;  %v756_v52 = vmul.f32 %v2970_v29, %v733_v30  ;;  %v685_v15 = vmul.f32 %v2082_v10, %v643_v63  ;;  %v2354_v24 = vmul.f32 %v2084_v11, %v605_v58 }
  0xd5   : > { %v590_v22 = vsel %vm449_vm0, %v586_v25, 0.0  ;;  %v2358_v3 = vadd.f32 %v742_v49, %v737_v5  ;;  %v608_v10 = vadd.f32 %v606_v27, %v601_v37  ;;  %v2370_v25 = vadd.f32 %v780_v61, %v775_v0 }
  0xd6   : > { %v2364_v11 = vadd.f32 %v761_v50, %v756_v52  ;;  %v679_v41 = vsel %vm449_vm0, %v677_v39, 0.0  ;;  %v639_v49 = vmul.f32 %v2280_v14, %v597_v33  ;;  %v614_v27 = vmul.f32 %v2230_v34, %v590_v22 }
  0xd7   : > { %v2382_v50 = vmul.f32 %v985_v51, %v2253_v53  ;;  %v2387_v52 = vmul.f32 %v1011_v54, %v2253_v53  ;;  %v2392_v39 = vmul.f32 %v1040_v55, %v2253_v53  ;;  %v2398_v0 = vmul.f32 %v1069_v57, %v2253_v53 }
  0xd8   : > { %v687_v37 = vmul.f32 %v679_v41, %v2241_v45  ;;  %v2408_v5 = vmul.f32 %v1098_v59, %v2253_v53  ;;  %v2418_v30 = vmul.f32 %v1156_v8, %v2253_v53  ;;  %v652_v41 = vmul.f32 %v2241_v45, %v590_v22 }
  0xd9   : > { %v681_v20 = vpop.permute.xlu1 %680  ;;  %v667_v7 = vpop.permute.xlu0 %666 }
  0xda   : > { %v683_v12 = vsel %vm458_vm1, 0.0, %v681_v20  ;;  %v2400_v20 = vadd.f32 %v613_v46, %v608_v10  ;;  %2996 = vst [vmem:[#allocation24_spill] sm:$0xff] %v2418_v30  ;;  %v620_v46 = vmul.f32 %v619_v2, %v597_v33  ;;  %v646_v10 = vadd.f32 %v644_v42, %v639_v49 }
  0xdb   : > { %v684_v58 = vmul.f32 %v683_v12, %v2280_v14  ;;  %v803_v61 = vpop.permute.xlu2 %802  ;;  %v2413_v14 = vmul.f32 %v1127_v60, %v2253_v53  ;;  %v2434_v2 = vmul.f32 %v2096_v13, %v2304_v31  ;;  %v2439_v33 = vmul.f32 %v2096_v13, %v760_v36 }
  0xdc   : > { %v2446_v42 = vstv %s2362_s10  ;;  %v2969_v45 = vrot.slane %v2400_v20, 7  ;;  %v807_v49 = vmul.f32 %v2110_v16, %v2304_v31  ;;  %v669_v62 = vsel %vm458_vm1, 0.0, %v667_v7  ;;  %s2461_s10 = sld [smem:[#allocation2 + $0x22]] }
  0xdd   : > { %v686_v12 = vadd.f32 %v685_v15, %v684_v58  ;;  %v2427_v15 = vmul.f32 %v1185_v9, %v2253_v53  ;;  %v616_v58 = vadd.f32 %v614_v27, %v609_v56  ;;  %v2443_v53 = vmul.f32 %v2096_v13, %v2322_v44 }
  0xde   : > { %v627_v13 = vadd.f32 %v2295_v38, %v620_v46  ;;  %v633_v27 = vmul.f32 %v631_v35, %v590_v22  ;;  %v805_v48 = vsel %vm458_vm1, 0.0, %v803_v61  ;;  %v653_v16 = vadd.f32 %v2337_v6, %v646_v10 }
  0xdf   : > { %2997 = vst [vmem:[#allocation25_spill] sm:$0xff] %v2427_v15  ;;  %v688_v56 = vadd.f32 %v687_v37, %v686_v12  ;;  %v2466_v37 = vmul.f32 %v985_v51, %v2309_v32  ;;  %v654_v31 = vadd.f32 %v652_v41, %v2350_v4  ;;  %v692_v12 = vrot.slane %v616_v58, 7 }
  0xe0   : > { %v2473_v35 = vmul.f32 %v1011_v54, %v2309_v32  ;;  %v2478_v38 = vmul.f32 %v1040_v55, %v2309_v32  ;;  %v2483_v7 = vmul.f32 %v1069_v57, %v2309_v32  ;;  %v2488_v51 = vmul.f32 %v1098_v59, %v2309_v32 }
  0xe1   : > { %v663_v26 = vpop.permute.xlu1 %662  ;;  %v730_v63 = vpop.permute.xlu0 %729  ;;  %v693_v6 = vsel %vm552_vm2, %v2969_v45, %v692_v12  ;;  %v670_v54 = vmul.f32 %v669_v62, %v2269_v1  ;;  %v705_v4 = vrot.slane %v688_v56, 1  ;;  %v2500_v57 = vmul.f32 %v1127_v60, %v2309_v32 }
  0xe2   : > { %v665_v55 = vsel %vm449_vm0, %v663_v26, 0.0  ;;  %v2505_v59 = vmul.f32 %v1156_v8, %v2309_v32  ;;  %v635_v22 = vadd.f32 %v633_v27, %v2345_v40  ;;  %v806_v61 = vmul.f32 %v805_v48, %v2301_v28 }
  0xe3   : > { %v866_v1 = vpop.permute.xlu2 %865  ;;  %v699_v62 = vrot.slane %v653_v16, 1  ;;  %v700_v26 = vrot.slane %v654_v31, 1  ;;  %v2510_v58 = vstv %s2403_s14  ;;  %v2513_v60 = vstv %s2422_s2  ;;  %s2537_s2 = sld [smem:[#allocation2 + $0x1d]] }
  0xe4   : > { %v709_v8 = vadd.f32 %v693_v6, %v635_v22  ;;  %v673_v41 = vmul.f32 %v665_v55, %v2230_v34  ;;  %v879_v40 = vmul.f32 %v2124_v19, %v2513_v60  ;;  %v870_v48 = vsel %vm458_vm1, 0.0, %v866_v1 }
  0xe5   : > { %v672_v56 = vadd.f32 %v2354_v24, %v670_v54  ;;  %v707_v27 = vsel %vm561_vm3, %v700_v26, %v705_v4  ;;  %v2971_v16 = vstv %s2430_s19  ;;  %v896_v31 = vstv %s2448_s15  ;;  %s1518_s15 = sshll.u32 %s1826_s21, 7 }
  0xe6   : > { %v734_v12 = vsel %vm458_vm1, 0.0, %v730_v63  ;;  %v898_v36 = vmul.f32 %v2124_v19, %v896_v31  ;;  %v2526_v6 = vstv %s2454_s26  ;;  %v2529_v34 = vstv %s2461_s10  ;;  %s1226_s10 = scalar_lea.hbm %s2958_s5, %s1518_s15 }
  0xe7   : > { %v917_v55 = vmul.f32 %v2124_v19, %v2529_v34  ;;  %v874_v22 = vmul.f32 %v2510_v58, %v870_v48  ;;  %v893_v24 = vmul.f32 %v2971_v16, %v870_v48  ;;  %v912_v54 = vmul.f32 %v2526_v6, %v870_v48 }
  0xe8   : > { %v1187_v63 = vmul.f32 %v1185_v9, %v2309_v32  ;;  %v634_v4 = vadd.f32 %v2329_v47, %v627_v13  ;;  %v711_v1 = vadd.f32 %v709_v8, %v707_v27  ;;  %v674_v45 = vadd.f32 %v673_v41, %v672_v56 }
  0xe9   : > { %v722_v46 = vpop.permute.xlu1 %721  ;;  %v720_v10 = vpop.permute.xlu0 %719  ;;  %v701_v29 = vsel %vm561_vm3, %v699_v62, %v700_v26  ;;  %v738_v19 = vmul.f32 %v2301_v28, %v734_v12  ;;  %v2545_v15 = vadd.f32 %v807_v49, %v806_v61  ;;  %v2548_v16 = vstv %s2495_s6 }
  0xea   : > { %v2998_v48 = vstv %s2245_s25  ;;  %v2554_v9 = vmul.f32 %v2117_v18, %v2513_v60  ;;  %v2557_v32 = vmul.f32 %v2117_v18, %v896_v31  ;;  %v2561_v47 = vmul.f32 %v2117_v18, %v2529_v34  ;;  %s2693_s25 = sld [smem:[#allocation6 + $0x1a]] }
  0xeb   : > { %v757_v30 = vmul.f32 %v2998_v48, %v734_v12  ;;  %v776_v28 = vmul.f32 %v2319_v43, %v734_v12  ;;  %v2564_v49 = vadd.f32 %v879_v40, %v874_v22  ;;  %v2566_v13 = vadd.f32 %v898_v36, %v893_v24 }
  0xec   : > { %v2568_v61 = vadd.f32 %v917_v55, %v912_v54  ;;  %v2999_v8 = vstv %s2274_s8  ;;  %v3000_v56 = vstv %s2282_s28  ;;  %v3001_v27 = vrot.slane %v2400_v20, 7 }
  0xed   : > { %v991_v41 = vmul.f32 %v2999_v8, %v711_v1  ;;  %v1018_v18 = vmul.f32 %v3000_v56, %v711_v1  ;;  %v2579_v40 = vmul.f32 %v2114_v17, %v2322_v44  ;;  %v3002_v36 = vstv %s2288_s29 }
  0xee   : > { %v696_v31 = vsel %vm552_vm2, %v674_v45, %v3001_v27  ;;  %v1047_v12 = vmul.f32 %v3002_v36, %v711_v1  ;;  %v745_v55 = vadd.f32 %v2434_v2, %v738_v19  ;;  %v726_v22 = vsel %vm449_vm0, %v722_v46, 0.0 }
  0xef   : > { %v725_v24 = vsel %vm449_vm0, %v720_v10, 0.0  ;;  %v3003_v54 = vstv %s2297_s30  ;;  %v3004_v48 = vstv %s2307_s16  ;;  %v3005_v8 = vstv %s2314_s17 }
  0xf0   : > { %v1076_v20 = vmul.f32 %v3003_v54, %v711_v1  ;;  %v1105_v45 = vmul.f32 %v3004_v48, %v711_v1  ;;  %v1134_v56 = vmul.f32 %v3005_v8, %v711_v1  ;;  %v764_v17 = vadd.f32 %v2439_v33, %v757_v30 }
  0xf1   : > { %v864_v62 = vpop.permute.xlu1 %863  ;;  %v817_v26 = vpop.permute.xlu0 %816  ;;  %v3006_v44 = vstv %s2324_s7  ;;  %v3007_v36 = vstv %s2334_s9  ;;  %v708_v19 = vadd.f32 %v696_v31, %v634_v4  ;;  %v2602_v46 = vstv %s2537_s2  ;;  %s1229_s2 = sshll.u32 %s1226_s10, 4  ;;  %s1230_s2 = int_to_ptr.hbm [resolvable:$true] %s1229_s2 }
  0xf2   : > { %v1163_v27 = vmul.f32 %v3006_v44, %v711_v1  ;;  %v1192_v2 = vmul.f32 %v3007_v36, %v711_v1  ;;  %v2605_v10 = vadd.f32 %v991_v41, %v2466_v37  ;;  %v2608_v54 = vadd.f32 %v1018_v18, %v2473_v35 }
  0xf3   : > { %v750_v48 = vmul.f32 %v2446_v42, %v726_v22  ;;  %v749_v8 = vmul.f32 %v2446_v42, %v725_v24  ;;  %v2613_v30 = vadd.f32 %v1047_v12, %v2478_v38  ;;  %v3008_v33 = vstv %s2368_s13  ;;  %s1416_s13 = sshll.u32 %s2022_s1, 7 }
  0xf4   : > { %v769_v44 = vmul.f32 %v3008_v33, %v726_v22  ;;  %v788_v4 = vmul.f32 %v2548_v16, %v726_v22  ;;  %v3009_v1 = vmov %v3008_v33  ;;  %v2621_v37 = vadd.f32 %v1076_v20, %v2483_v7  ;;  %s2843_s14 = scalar_lea.vmem [#allocation12], %s1416_s13 }
  0xf5   : > { %v768_v31 = vmul.f32 %v3009_v1, %v725_v24  ;;  %v2624_v35 = vadd.f32 %v1105_v45, %v2488_v51  ;;  %v2627_v41 = vadd.f32 %v1134_v56, %v2500_v57  ;;  %v787_v18 = vmul.f32 %v2548_v16, %v725_v24  ;;  %s1227_s6 = sshll.u32 %s2843_s14, 4  ;;  %s1228_s6 = int_to_ptr.vmem [resolvable:$true] %s1227_s6 }
  0xf6   : > { %v2631_v38 = vadd.f32 %v1163_v27, %v2505_v59  ;;  %v710_v12 = vadd.f32 %v708_v19, %v701_v29  ;;  %v783_v36 = vadd.f32 %v2443_v53, %v776_v28  ;;  %v819_v22 = vsel %vm458_vm1, 0.0, %v817_v26 }
  0xf7   : > { %v2635_v20 = vadd.f32 %v1192_v2, %v1187_v63  ;;  %v752_v51 = vadd.f32 %v750_v48, %v745_v55  ;;  %v2638_v57 = vadd.f32 %v749_v8, %v2358_v3  ;;  %v903_v24 = vstv %s2581_s0  ;;  %v856_v63 = vpop.permute.xlu2 %855  ;;  %s1213_s0 = scalar_lea.sflag [#allocation4], %s2022_s1 }
  0xf8   : > { %v771_v29 = vadd.f32 %v769_v44, %v764_v17  ;;  %v2643_v53 = vadd.f32 %v788_v4, %v783_v36  ;;  %v2646_v59 = vadd.f32 %v768_v31, %v2364_v11  ;;  %v789_v3 = vadd.f32 %v787_v18, %v2370_v25 }
  0xf9   : > { %v813_v33 = vpop.permute.xlu1 %812  ;;  %v799_v7 = vpop.permute.xlu0 %798  ;;  %v869_v26 = vsel %vm458_vm1, 0.0, %v864_v62  ;;  %v820_v55 = vmul.f32 %v819_v22, %v2319_v43  ;;  %v2655_v45 = vstv %s2595_s3  ;;  %v3010_v11 = vstv %s2274_s8  ;;  %s2711_s8 = sld [smem:[#allocation6 + $0x3]]  ;;  %s1754_s3 = sshra.s32 %s1230_s2, 4  ;;  %s1755_s3 = int_to_ptr.hbm [resolvable:$true] %s1754_s3 }
  0xfa   : > { %v815_v28 = vsel %vm449_vm0, %v813_v33, 0.0  ;;  %v990_v56 = vmul.f32 %v3010_v11, %v710_v12  ;;  %v3011_v17 = vstv %s2282_s28  ;;  %v3012_v2 = vstv %s2288_s29  ;;  %s2718_s28 = sld [smem:[#allocation6 + $0x7]]  ;;  %p1761_p10 = scmp.lt.s32.totalorder %s1755_s3, %s2958_s5 }
  0xfb   : > { %v1017_v27 = vmul.f32 %v3011_v17, %v710_v12  ;;  %v1046_v19 = vmul.f32 %v3012_v2, %v710_v12  ;;  %v3013_v48 = vstv %s2297_s30  ;;  %v3014_v25 = vstv %s2307_s16  ;;  %s2728_s29 = sld [smem:[#allocation6 + $0xb]] }
  0xfc   : > { %v1075_v8 = vmul.f32 %v3013_v48, %v710_v12  ;;  %v1104_v62 = vmul.f32 %v3014_v25, %v710_v12  ;;  %v828_v44 = vrot.slane %v752_v51, 7  ;;  %v827_v43 = vrot.slane %v2638_v57, 7  ;;  %s2740_s30 = sld [smem:[#allocation6 + $0xf]] }
  0xfd   : > { %v823_v4 = vmul.f32 %v815_v28, %v2548_v16  ;;  %v3015_v1 = vstv %s2314_s17  ;;  %v3016_v18 = vstv %s2324_s7  ;;  %v873_v22 = vmul.f32 %v2510_v58, %v869_v26  ;;  %s2744_s16 = sld [smem:[#allocation6 + $0x13]] }
  0xfe   : > { %v1133_v31 = vmul.f32 %v3015_v1, %v710_v12  ;;  %v2679_v36 = vmul.f32 %v3016_v18, %v710_v12  ;;  %v3017_v33 = vstv %s2430_s19  ;;  %v3018_v17 = vstv %s2334_s9  ;;  %s2702_s19 = sld [smem:[#allocation6 + $0x1e]] }
  0xff   : > { %v892_v11 = vmul.f32 %v3017_v33, %v869_v26  ;;  %v2688_v2 = vmul.f32 %v3018_v17, %v710_v12  ;;  %v911_v51 = vmul.f32 %v2526_v6, %v869_v26  ;;  %v822_v48 = vadd.f32 %v2579_v40, %v820_v55  ;;  %s2751_s17 = sld [smem:[#allocation6 + $0x17]] }
 0x100   : > { %v861_v16 = vsel %vm449_vm0, %v856_v63, 0.0  ;;  %v2696_v28 = vadd.f32 %v990_v56, %v2382_v50  ;;  %v2699_v25 = vadd.f32 %v1017_v27, %v2387_v52  ;;  %v836_v1 = vrot.slane %v2643_v53, 1  ;;  %s2758_s7 = sld [smem:[#allocation6 + $0x1b]] }
 0x101   : > { %v835_v18 = vrot.slane %v789_v3, 1  ;;  %v939_v12 = vpop.permute.xlu1 %938  ;;  %v858_v26 = vpop.permute.xlu0 %857  ;;  %v2705_v40 = vadd.f32 %v1046_v19, %v2392_v39  ;;  %v829_v63 = vsel %vm552_vm2, %v827_v43, %v828_v44  ;;  %v824_v55 = vadd.f32 %v823_v4, %v822_v48  ;;  %s2772_s9 = sld [smem:[#allocation6 + $0x1f]] }
 0x102   : > { %v801_v50 = vsel %vm449_vm0, %v799_v7, 0.0  ;;  %v880_v52 = vadd.f32 %v2554_v9, %v873_v22  ;;  %v899_v53 = vadd.f32 %v2557_v32, %v892_v11  ;;  %v885_v3 = vmul.f32 %v2602_v46, %v861_v16  ;;  %v953_v39 = vpop.permute.xlu2 %952 }
 0x103   : > { %v904_v56 = vmul.f32 %v903_v24, %v861_v16  ;;  %v2721_v27 = vadd.f32 %v1075_v8, %v2398_v0  ;;  %v2724_v19 = vadd.f32 %v1104_v62, %v2408_v5  ;;  %v918_v7 = vadd.f32 %v2561_v47, %v911_v51 }
 0x104   : > { %v923_v9 = vmul.f32 %v2655_v45, %v861_v16  ;;  %v2731_v32 = vadd.f32 %v1133_v31, %v2413_v14  ;;  %v2734_v44 = vsel %vm561_vm3, %v835_v18, %v836_v1  ;;  %v995_v0 = vstv %s2641_s4  ;;  %s1756_s4 = scalar_lea.hbm %s1755_s3, 128 }
 0x105   : > { %v809_v8 = vmul.f32 %v801_v50, %v2446_v42  ;;  %v845_v5 = vadd.f32 %v829_v63, %v771_v29  ;;  %v841_v62 = vrot.slane %v824_v55, 1  ;;  %v862_v4 = vsel %vm449_vm0, %v858_v26, 0.0  ;;  %p1757_p7 = scmp.ne.s32.totalorder %s1755_s3, %s1756_s4 }
 0x106   : > { %v955_v47 = vsel %vm458_vm1, 0.0, %v953_v39  ;;  %v887_v22 = vadd.f32 %v885_v3, %v880_v52  ;;  %v906_v14 = vadd.f32 %v904_v56, %v899_v53  ;;  %v1023_v31 = vstv %s2648_s20 }
 0x107   : > { %v1052_v33 = vstv %s2657_s22  ;;  %v2746_v11 = vadd.f32 %v923_v9, %v918_v7  ;;  %v1081_v42 = vstv %s2667_s23  ;;  %v1110_v29 = vstv %s2672_s24  ;;  %p1758_p8 = pnand %p1757_p7, %p1971_p0  ;;  %s1760_s23 = scalar_lea.hbm %s2958_s5, 256 }
 0x108   : > { %v941_v17 = vsel %vm458_vm1, 0.0, %v939_v12  ;;  %v810_v51 = vadd.f32 %v809_v8, %v2545_v15  ;;  %v886_v48 = vmul.f32 %v2602_v46, %v862_v4  ;;  %v957_v16 = vmul.f32 %v2142_v23, %v2529_v34  ;;  %p1762_p11 = scmp.lt.s32.totalorder %s1760_s23, %s1756_s4 }
 0x109   : > { %v956_v18 = vmul.f32 %v955_v47, %v2526_v6  ;;  %v1139_v26 = vstv %s2684_s27  ;;  %v1168_v63 = vstv %s2693_s25  ;;  %v843_v12 = vsel %vm561_vm3, %v836_v1, %v841_v62  ;;  %v949_v23 = vpop.permute.xlu1 %948  ;;  %v935_v34 = vpop.permute.xlu0 %934  ;;  %p1759_p9 = pneg %p1758_p8 }
 0x10a   : > { %v924_v55 = vmul.f32 %v2655_v45, %v862_v4  ;;  %v963_v15 = vrot.slane %v887_v22, 7  ;;  %v1197_v50 = vstv %s2702_s19  ;;  %v943_v52 = vmul.f32 %v2135_v21, %v2513_v60  ;;  %p1763_p12 = por %p1762_p11, %p1761_p10 }
 0x10b   : > { %v942_v53 = vmul.f32 %v941_v17, %v2510_v58  ;;  %v971_v6 = vrot.slane %v2746_v11, 1  ;;  %v1001_v3 = vstv %s2711_s8  ;;  %v1030_v56 = vstv %s2718_s28 }
 0x10c   : > { %v1059_v39 = vstv %s2728_s29  ;;  %v847_v1 = vadd.f32 %v845_v5, %v843_v12  ;;  %v832_v7 = vsel %vm552_vm2, %v810_v51, %v827_v43  ;;  %v888_v21 = vadd.f32 %v886_v48, %v2564_v49  ;;  %p1764_p13 = pnand %p1763_p12, %p1759_p9 }
 0x10d   : > { %v958_v58 = vadd.f32 %v957_v16, %v956_v18  ;;  %v905_v60 = vmul.f32 %v903_v24, %v862_v4  ;;  %v926_v9 = vadd.f32 %v924_v55, %v2568_v61  ;;  %v951_v8 = vsel %vm449_vm0, %v949_v23, 0.0 }
 0x10e   : > { %v937_v62 = vsel %vm449_vm0, %v935_v34, 0.0  ;;  %v944_v47 = vadd.f32 %v943_v52, %v942_v53  ;;  %v964_v5 = vrot.slane %v888_v21, 7  ;;  %v959_v57 = vmul.f32 %v951_v8, %v2655_v45 }
 0x10f   : > { %v945_v49 = vmul.f32 %v937_v62, %v2602_v46  ;;  %v844_v43 = vadd.f32 %v832_v7, %v2646_v59  ;;  %v1088_v22 = vstv %s2740_s30  ;;  %v1117_v24 = vstv %s2744_s16 }
 0x110   : > { %v1146_v4 = vstv %s2751_s17  ;;  %v965_v61 = vsel %vm552_vm2, %v963_v15, %v964_v5  ;;  %v1175_v11 = vstv %s2758_s7  ;;  %v960_v17 = vadd.f32 %v959_v57, %v958_v58 }
 0x111   : > { %v946_v51 = vadd.f32 %v945_v49, %v944_v47  ;;  %v997_v45 = vmul.f32 %v995_v0, %v847_v1  ;;  %v1025_v48 = vmul.f32 %v1023_v31, %v847_v1  ;;  %v907_v46 = vadd.f32 %v905_v60, %v2566_v13 }
 0x112   : > { %v972_v59 = vrot.slane %v926_v9, 1  ;;  %v1054_v16 = vmul.f32 %v1052_v33, %v847_v1  ;;  %v1083_v18 = vmul.f32 %v1081_v42, %v847_v1  ;;  %v977_v12 = vrot.slane %v960_v17, 1 }
 0x113   : > { %v968_v55 = vsel %vm552_vm2, %v946_v51, %v963_v15  ;;  %v846_v52 = vadd.f32 %v844_v43, %v2734_v44  ;;  %v981_v53 = vadd.f32 %v965_v61, %v907_v46  ;;  %v1204_v23 = vstv %s2772_s9 }
 0x114   : > { %v980_v34 = vadd.f32 %v968_v55, %v906_v14  ;;  %v1112_v7 = vmul.f32 %v1110_v29, %v847_v1  ;;  %v1141_v13 = vmul.f32 %v1139_v26, %v847_v1  ;;  %v1170_v21 = vmul.f32 %v1168_v63, %v847_v1 }
 0x115   : > { %v979_v58 = vsel %vm561_vm3, %v972_v59, %v977_v12  ;;  %v999_v15 = vadd.f32 %v997_v45, %v2605_v10  ;;  %v1199_v44 = vmul.f32 %v1197_v50, %v847_v1  ;;  %v973_v60 = vsel %vm561_vm3, %v971_v6, %v972_v59 }
 0x116   : > { %v983_v14 = vadd.f32 %v981_v53, %v979_v58  ;;  %v1027_v9 = vadd.f32 %v1025_v48, %v2608_v54  ;;  %v1056_v8 = vadd.f32 %v1054_v16, %v2613_v30  ;;  %v1085_v62 = vadd.f32 %v1083_v18, %v2621_v37 }
 0x117   : > { %v982_v47 = vadd.f32 %v980_v34, %v973_v60  ;;  %v1114_v57 = vadd.f32 %v1112_v7, %v2624_v35  ;;  %v996_v54 = vmul.f32 %v995_v0, %v846_v52  ;;  %v1143_v51 = vadd.f32 %v1141_v13, %v2627_v41 }
 0x118   : > { %v1003_v5 = vmul.f32 %v1001_v3, %v983_v14  ;;  %v1032_v10 = vmul.f32 %v1030_v56, %v983_v14  ;;  %v1061_v1 = vmul.f32 %v1059_v39, %v983_v14  ;;  %v1090_v6 = vmul.f32 %v1088_v22, %v983_v14 }
 0x119   : > { %v1119_v30 = vmul.f32 %v1117_v24, %v983_v14  ;;  %v1148_v37 = vmul.f32 %v1146_v4, %v983_v14  ;;  %v1177_v17 = vmul.f32 %v1175_v11, %v983_v14  ;;  %v1024_v45 = vmul.f32 %v1023_v31, %v846_v52 }
 0x11a   : > { %v1005_v49 = vadd.f32 %v1003_v5, %v999_v15  ;;  %v1034_v43 = vadd.f32 %v1032_v10, %v1027_v9  ;;  %v1063_v61 = vadd.f32 %v1061_v1, %v1056_v8  ;;  %v1092_v35 = vadd.f32 %v1090_v6, %v1085_v62 }
 0x11b   : > { %v1206_v0 = vmul.f32 %v1204_v23, %v983_v14  ;;  %v1172_v48 = vadd.f32 %v1170_v21, %v2631_v38  ;;  %v1053_v46 = vmul.f32 %v1052_v33, %v846_v52  ;;  %v1121_v41 = vadd.f32 %v1119_v30, %v1114_v57 }
 0x11c   : > { %1008 = vst.msk [vmem:[%s2843_s14 + $0x8] sm:$0xff] %vm1006_vm4, %v1005_v49  ;;  %v1002_v31 = vmul.f32 %v1001_v3, %v982_v47  ;;  %v1201_v59 = vadd.f32 %v1199_v44, %v2635_v20  ;;  %v1082_v38 = vmul.f32 %v1081_v42, %v846_v52  ;;  %v1150_v33 = vadd.f32 %v1148_v37, %v1143_v51 }
 0x11d   : > { %1472 = vst.msk [vmem:[%s2843_s14 + $0x18] sm:$0xff] %vm1006_vm4, %v1034_v43  ;;  %v1031_v16 = vmul.f32 %v1030_v56, %v982_v47  ;;  %v998_v18 = vadd.f32 %v996_v54, %v2696_v28  ;;  %v1111_v12 = vmul.f32 %v1110_v29, %v846_v52  ;;  %v1179_v3 = vadd.f32 %v1177_v17, %v1172_v48 }
 0x11e   : > { %1478 = vst.msk [vmem:[%s2843_s14 + $0x28] sm:$0xff] %vm1006_vm4, %v1063_v61  ;;  %v1060_v20 = vmul.f32 %v1059_v39, %v982_v47  ;;  %v1026_v42 = vadd.f32 %v1024_v45, %v2699_v25  ;;  %v1140_v55 = vmul.f32 %v1139_v26, %v846_v52  ;;  %v1208_v56 = vadd.f32 %v1206_v0, %v1201_v59 }
 0x11f   : > { %1484 = vst.msk [vmem:[%s2843_s14 + $0x38] sm:$0xff] %vm1006_vm4, %v1092_v35  ;;  %v1089_v28 = vmul.f32 %v1088_v22, %v982_v47  ;;  %v1055_v29 = vadd.f32 %v1053_v46, %v2705_v40  ;;  %v1169_v53 = vmul.f32 %v1168_v63, %v846_v52  ;;  %v1004_v39 = vadd.f32 %v1002_v31, %v998_v18  ;;  %v3019_v40 = vld [vmem:[#allocation24_spill] sm:$0xff] }
 0x120   : > { %1490 = vst.msk [vmem:[%s2843_s14 + $0x48] sm:$0xff] %vm1006_vm4, %v1121_v41  ;;  %v1118_v25 = vmul.f32 %v1117_v24, %v982_v47  ;;  %v1084_v26 = vadd.f32 %v1082_v38, %v2721_v27  ;;  %v1198_v34 = vmul.f32 %v1197_v50, %v846_v52  ;;  %v1033_v22 = vadd.f32 %v1031_v16, %v1026_v42  ;;  %v3020_v50 = vld [vmem:[#allocation25_spill] sm:$0xff] }
 0x121   : > { %1496 = vst.msk [vmem:[%s2843_s14 + $0x58] sm:$0xff] %vm1006_vm4, %v1150_v33  ;;  %v1147_v7 = vmul.f32 %v1146_v4, %v982_v47  ;;  %v1164_v63 = vadd.f32 %v2679_v36, %v3019_v40  ;;  %v1113_v13 = vadd.f32 %v1111_v12, %v2724_v19  ;;  %v1062_v24 = vadd.f32 %v1060_v20, %v1055_v29 }
 0x122   : > { %1502 = vst.msk [vmem:[%s2843_s14 + $0x68] sm:$0xff] %vm1006_vm4, %v1179_v3  ;;  %v1176_v27 = vmul.f32 %v1175_v11, %v982_v47  ;;  %v1193_v4 = vadd.f32 %v2688_v2, %v3020_v50  ;;  %v1142_v52 = vadd.f32 %v1140_v55, %v2731_v32  ;;  %v1091_v36 = vadd.f32 %v1089_v28, %v1084_v26 }
 0x123   : > { %1508 = vst.msk [vmem:[%s2843_s14 + $0x78] sm:$0xff] %vm1006_vm4, %v1208_v56  ;;  %v1205_v19 = vmul.f32 %v1204_v23, %v982_v47  ;;  %v1171_v21 = vadd.f32 %v1169_v53, %v1164_v63  ;;  %v1120_v11 = vadd.f32 %v1118_v25, %v1113_v13 }
 0x124   : > { %1007 = vst.msk [vmem:[%s2843_s14] sm:$0xff] %vm1006_vm4, %v1004_v39  ;;  %v1200_v58 = vadd.f32 %v1198_v34, %v1193_v4  ;;  %v1149_v2 = vadd.f32 %v1147_v7, %v1142_v52 }
 0x125   : > { %1471 = vst.msk [vmem:[%s2843_s14 + $0x10] sm:$0xff] %vm1006_vm4, %v1033_v22  ;;  %v1178_v32 = vadd.f32 %v1176_v27, %v1171_v21 }
 0x126   : > { %1477 = vst.msk [vmem:[%s2843_s14 + $0x20] sm:$0xff] %vm1006_vm4, %v1062_v24  ;;  %v1207_v23 = vadd.f32 %v1205_v19, %v1200_v58 }
 0x127   : > { %1483 = vst.msk [vmem:[%s2843_s14 + $0x30] sm:$0xff] %vm1006_vm4, %v1091_v36 }
 0x128   : > { %1489 = vst.msk [vmem:[%s2843_s14 + $0x40] sm:$0xff] %vm1006_vm4, %v1120_v11 }
 0x129   : > { %1495 = vst.msk [vmem:[%s2843_s14 + $0x50] sm:$0xff] %vm1006_vm4, %v1149_v2 }
 0x12a   : > { %1501 = vst.msk [vmem:[%s2843_s14 + $0x60] sm:$0xff] %vm1006_vm4, %v1178_v32 }
 0x12b   : > { %1507 = vst.msk [vmem:[%s2843_s14 + $0x70] sm:$0xff] %vm1006_vm4, %v1207_v23 }
 0x12c   : > { %1767 = shalt.err (!%p1764_p13)
}
 0x12d   : > { %s1843_s1 = smov 128   ;;  %s1844_s25 = smov 8  }
 0x12e   : > { %1534 = dma.vmem_to_hbm [thread:$0]  (%p1971_p0), %s1228_s6, 2048, %s1230_s2, %s1213_s0, %s1843_s1, %s1843_s1, %s1844_s25  }
 0x12f PF: > { %s3021_s19 = sld [smem:[#allocation21_spill]]  ;;  %s1244_s8 = sand.u32 1, %s1814_s18  }
 0x130   : > { %p1554_p4 = pnand %p1400_p3, %p1975_p2  ;;  %s1245_s28 = scalar_lea.sflag [#allocation4], %s1244_s8 }
 0x132   : > { %p1555_p5 = pneg %p1554_p4 }
 0x134   : > { %1809 = dma.done.wait (%p1555_p5), %s1245_s28, 2048  }
 0x135   : > { %1811 = vsyncadd (%p1555_p5), %s1245_s28, 4294965248  ;;  %s26_s23 = sadd.s32 1, %s3021_s19   ;;  %s3022_s18 = sld [smem:[#allocation18_spill]] }
 0x136   : > { %p23_p1 = scmp.ge.s32.totalorder %s26_s23, 4   ;;  %s3023_s19 = sld [smem:[#allocation19_spill]] }
 0x137   : > { %s3024_s20 = sld [smem:[#allocation23_spill]] }
 0x138   : > { %s3025_s21 = sld [smem:[#allocation20_spill]]  ;;  %25 = sbr.rel (!%p23_p1) target bundleno = 16 (0x10), region = 134 }
 0x139   : > { %s3026_s22 = sld [smem:[#allocation22_spill]] }
 0x13d   :  { %1251 = vsyncpa [#allocation3], 1 }
 0x13e   :  { %1253 = vsyncpa [#allocation3 + $0x1], 1 }
 0x13f   :  { %1254 = vsyncpa [#allocation10], 1 }
 0x140   :  { %1256 = vsyncpa [#allocation10 + $0x1], 1 }
 0x141   :  { %1257 = vsyncpa [#allocation4], 1 }
 0x142   :  { %1259 = vsyncpa [#allocation4 + $0x1], 1 }
 0x143   :  { %1260 = vsyncpa [#allocation5], 1 }
 0x144   :  { %1262 = vsyncpa [#allocation5 + $0x1], 1 }
 0x145   :  { %1263 = vsyncpa [#allocation7], 1 }

</bundles_post_ra>
